<compile_context>
chip_gen: v5e
topology: v5e:2x2
jax: 0.10.0
libtpu: 0.0.40
codegen_flags: <defaults>
</compile_context>

<pallas_src>
import functools

import jax
import jax.numpy as jnp
from jax.experimental import pallas as pl
from jax.experimental.pallas import tpu as pltpu


def _round_up(x, m):
    return ((x + m - 1) // m) * m


def actor_kernel(x_ref, w1_ref, b1_ref, w2_ref, b2_ref, w3_ref, b3_ref,
                 wh_ref, bh_ref, out_ref):
    # Activations enter in f32; cast to bf16 for the MXU, accumulate in f32.
    x = x_ref[...].astype(jnp.bfloat16)

    # fc1 + relu
    h = jnp.dot(x, w1_ref[...], preferred_element_type=jnp.float32) + b1_ref[...]
    h = jnp.maximum(h, 0.0).astype(jnp.bfloat16)
    # fc2 + relu
    h = jnp.dot(h, w2_ref[...], preferred_element_type=jnp.float32) + b2_ref[...]
    h = jnp.maximum(h, 0.0).astype(jnp.bfloat16)
    # fc3 + relu
    h = jnp.dot(h, w3_ref[...], preferred_element_type=jnp.float32) + b3_ref[...]
    h = jnp.maximum(h, 0.0).astype(jnp.bfloat16)
    # action_head (lane-padded to 128; padded lanes carry a -1e30 f32 bias)
    logits = jnp.dot(h, wh_ref[...], preferred_element_type=jnp.float32) + bh_ref[...]

    # Numerically stable softmax over dim=1 (actions). Padded lanes have
    # logits ~ -1e30, so exp() underflows to exactly 0 and they contribute
    # nothing to the denominator. Exact divide (not approx reciprocal).
    m = jnp.max(logits, axis=1, keepdims=True)
    e = jnp.exp(logits - m)
    denom = jnp.sum(e, axis=1, keepdims=True)
    out_ref[...] = (e / denom).astype(out_ref.dtype)


def _choose_tiling(batch, block_m):
    """Row-block size and padded batch.

    Small batches (RL rollout): one grid step, minimal sublane padding.
    Large batches: tm a multiple of 256 (fills the MXU on v6e/v7x), and an
    even number of grid steps so the v7x TensorCore pair stays balanced.
    """
    min_rows = _round_up(batch, 8)
    if min_rows <= max(block_m, 8):
        return min_rows, min_rows                     # grid = (1,)
    tm = max(256, _round_up(block_m, 256))
    padded = _round_up(batch, 2 * tm)                 # even step count
    return tm, padded


@functools.partial(jax.jit, static_argnames=("block_m",))
def actor_forward(x, params, *, block_m=512):
    (w1, b1), (w2, b2), (w3, b3), (wh, bh) = params
    batch, state_dim = x.shape
    hidden = w1.shape[1]
    action_dim = wh.shape[1]

    tm, padded_batch = _choose_tiling(batch, block_m)
    if padded_batch != batch:
        x = jnp.pad(x, ((0, padded_batch - batch), (0, 0)))

    # Lane-dense output head: pad to a multiple of 128 lanes. Padded weight
    # columns are zero; padded biases are -1e30 (f32) so softmax of the
    # padded lanes is exactly 0.
    n_pad = _round_up(action_dim, 128)
    if n_pad != action_dim:
        wh = jnp.pad(wh, ((0, 0), (0, n_pad - action_dim)))
        bh = jnp.pad(bh, ((0, 0), (0, n_pad - action_dim)),
                     constant_values=-1e30)

    grid = (padded_batch // tm,)
    const = lambda i: (0, 0)          # same block every step -> VMEM-resident
    resident = pl.Buffered(1)         # never re-DMA'd: single buffer is enough

    out = pl.pallas_call(
        actor_kernel,
        out_shape=jax.ShapeDtypeStruct((padded_batch, n_pad), jnp.bfloat16),
        grid=grid,
        in_specs=[
            pl.BlockSpec((tm, state_dim), lambda i: (i, 0)),                    # x
            pl.BlockSpec((state_dim, hidden), const, pipeline_mode=resident),   # w1
            pl.BlockSpec((1, hidden), const, pipeline_mode=resident),           # b1
            pl.BlockSpec((hidden, hidden), const, pipeline_mode=resident),      # w2
            pl.BlockSpec((1, hidden), const, pipeline_mode=resident),           # b2
            pl.BlockSpec((hidden, hidden), const, pipeline_mode=resident),      # w3
            pl.BlockSpec((1, hidden), const, pipeline_mode=resident),           # b3
            pl.BlockSpec((hidden, n_pad), const, pipeline_mode=resident),       # wh
            pl.BlockSpec((1, n_pad), const, pipeline_mode=resident),            # bh
        ],
        out_specs=pl.BlockSpec((tm, n_pad), lambda i: (i, 0)),
        compiler_params=pltpu.CompilerParams(
            dimension_semantics=("parallel",),   # 2-TC sharding on v7x
            # v5e's default scoped VMEM is 16 MiB; large row tiles need more.
            # 48 MiB stays within v7x's 64 MiB physical VMEM.
            vmem_limit_bytes=(48 * 1024 * 1024 if tm >= 512 else None),
        ),
    )(x, w1, b1, w2, b2, w3, b3, wh, bh)

    # Slice away padded rows / lanes and restore the module's f32 output.
    return out[:batch, :action_dim].astype(jnp.float32)


def init_linear(key, fan_in, fan_out):
    # Deterministic init mimicking PyTorch Linear default (uniform +-1/sqrt(fan_in)).
    kw, kb = jax.random.split(key)
    bound = 1.0 / jnp.sqrt(fan_in)
    # Weight stored as [in, out] (transposed vs PyTorch's [out, in]), kept in
    # bf16 to halve HBM weight traffic; bias stays f32 (softmax-mask invariant).
    w = jax.random.uniform(kw, (fan_in, fan_out), jnp.float32, -bound, bound)
    b = jax.random.uniform(kb, (1, fan_out), jnp.float32, -bound, bound)
    return w.astype(jnp.bfloat16), b


def reference_forward(x, params):
    # Plain-JAX reference using the same (bf16-quantized) weights in f32 math.
    (w1, b1), (w2, b2), (w3, b3), (wh, bh) = params
    h = jax.nn.relu(x @ w1.astype(jnp.float32) + b1)
    h = jax.nn.relu(h @ w2.astype(jnp.float32) + b2)
    h = jax.nn.relu(h @ w3.astype(jnp.float32) + b3)
    logits = h @ wh.astype(jnp.float32) + bh
    return jax.nn.softmax(logits, axis=1)


if __name__ == "__main__":
    STATE_DIM = 8
    ACTION_DIM = 4
    HIDDEN = 512          # fixed by the PyTorch module
    BATCH_SMALL = 20      # RL rollout path: single grid step, no 128-row padding
    BATCH_LARGE = 600     # training path: tm=512, even 2-step grid (v7x balance)

    root = jax.random.PRNGKey(0)
    k_xs, k_xl, k1, k2, k3, k4 = jax.random.split(root, 6)

    params = (
        init_linear(k1, STATE_DIM, HIDDEN),   # fc1
        init_linear(k2, HIDDEN, HIDDEN),      # fc2
        init_linear(k3, HIDDEN, HIDDEN),      # fc3
        init_linear(k4, HIDDEN, ACTION_DIM),  # action_head
    )

    x_small = jax.random.normal(k_xs, (BATCH_SMALL, STATE_DIM), jnp.float32)
    x_large = jax.random.normal(k_xl, (BATCH_LARGE, STATE_DIM), jnp.float32)

    for x in (x_small, x_large):
        action_prob = jax.block_until_ready(actor_forward(x, params))
        ref = reference_forward(x, params)

        assert action_prob.shape == (x.shape[0], ACTION_DIM)

        # Rows of the softmax output sum to 1 up to bf16 output rounding.
        row_sums = jnp.sum(action_prob, axis=1)
        assert jnp.allclose(row_sums, jnp.ones_like(row_sums), atol=2e-2), row_sums

        # Agree with the plain-JAX reference up to bf16 activation/output rounding.
        assert jnp.allclose(action_prob, ref, atol=3e-2), float(
            jnp.max(jnp.abs(action_prob - ref)))

    print("KERNEL_OK")
</pallas_src>

<mosaic_0001>
module attributes {stable_mosaic.version = 11 : i64} {
  func.func @actor_kernel(%arg0: i32, %arg1: memref<24x8xf32, #tpu.memory_space<vmem>>, %arg2: memref<8x512xbf16, #tpu.memory_space<vmem>>, %arg3: memref<1x512xf32, #tpu.memory_space<vmem>>, %arg4: memref<512x512xbf16, #tpu.memory_space<vmem>>, %arg5: memref<1x512xf32, #tpu.memory_space<vmem>>, %arg6: memref<512x512xbf16, #tpu.memory_space<vmem>>, %arg7: memref<1x512xf32, #tpu.memory_space<vmem>>, %arg8: memref<512x128xbf16, #tpu.memory_space<vmem>>, %arg9: memref<1x128xf32, #tpu.memory_space<vmem>>, %arg10: memref<24x128xbf16, #tpu.memory_space<vmem>>) attributes {dimension_semantics = [#tpu.dimension_semantics<parallel>], iteration_bounds = array<i64: 1>, scalar_prefetch = 0 : i64, scratch_operands = 0 : i64, tpu.core_type = #tpu.core_type<tc>, window_params = [{transform_indices = @transform_0, window_bounds = array<i64: 24, 8>}, {pipeline_mode = #tpu.pipeline_mode<synchronous>, transform_indices = @transform_1, window_bounds = array<i64: 8, 512>}, {pipeline_mode = #tpu.pipeline_mode<synchronous>, transform_indices = @transform_2, window_bounds = array<i64: 1, 512>}, {pipeline_mode = #tpu.pipeline_mode<synchronous>, transform_indices = @transform_3, window_bounds = array<i64: 512, 512>}, {pipeline_mode = #tpu.pipeline_mode<synchronous>, transform_indices = @transform_4, window_bounds = array<i64: 1, 512>}, {pipeline_mode = #tpu.pipeline_mode<synchronous>, transform_indices = @transform_5, window_bounds = array<i64: 512, 512>}, {pipeline_mode = #tpu.pipeline_mode<synchronous>, transform_indices = @transform_6, window_bounds = array<i64: 1, 512>}, {pipeline_mode = #tpu.pipeline_mode<synchronous>, transform_indices = @transform_7, window_bounds = array<i64: 512, 128>}, {pipeline_mode = #tpu.pipeline_mode<synchronous>, transform_indices = @transform_8, window_bounds = array<i64: 1, 128>}, {transform_indices = @transform_9, window_bounds = array<i64: 24, 128>}]} {
    %c0 = arith.constant 0 : index
    %c0_0 = arith.constant 0 : index
    %0 = vector.load %arg1[%c0, %c0_0] : memref<24x8xf32, #tpu.memory_space<vmem>>, vector<24x8xf32>
    %1 = arith.truncf %0 : vector<24x8xf32> to vector<24x8xbf16>
    %c0_1 = arith.constant 0 : index
    %c0_2 = arith.constant 0 : index
    %2 = vector.load %arg2[%c0_1, %c0_2] : memref<8x512xbf16, #tpu.memory_space<vmem>>, vector<8x512xbf16>
    %cst = arith.constant dense<0.000000e+00> : vector<24x512xf32>
    %3 = tpu.matmul %1, %2, %cst {dimension_numbers = #tpu.dot_dimension_numbers<[1], [0], [0], [1], [0, 0, 1, 1], [], []>} : vector<24x8xbf16>, vector<8x512xbf16>, vector<24x512xf32> -> vector<24x512xf32>
    %c0_3 = arith.constant 0 : index
    %c0_4 = arith.constant 0 : index
    %4 = vector.load %arg3[%c0_3, %c0_4] : memref<1x512xf32, #tpu.memory_space<vmem>>, vector<1x512xf32>
    %5 = vector.broadcast %4 : vector<1x512xf32> to vector<24x512xf32>
    %6 = arith.addf %3, %5 : vector<24x512xf32>
    %cst_5 = arith.constant 0.000000e+00 : f32
    %7 = vector.broadcast %cst_5 : f32 to vector<24x512xf32>
    %8 = arith.maximumf %6, %7 : vector<24x512xf32>
    %9 = arith.truncf %8 : vector<24x512xf32> to vector<24x512xbf16>
    %c0_6 = arith.constant 0 : index
    %c0_7 = arith.constant 0 : index
    %10 = vector.load %arg4[%c0_6, %c0_7] : memref<512x512xbf16, #tpu.memory_space<vmem>>, vector<512x512xbf16>
    %cst_8 = arith.constant dense<0.000000e+00> : vector<24x512xf32>
    %11 = tpu.matmul %9, %10, %cst_8 {dimension_numbers = #tpu.dot_dimension_numbers<[1], [0], [0], [1], [0, 0, 1, 1], [], []>} : vector<24x512xbf16>, vector<512x512xbf16>, vector<24x512xf32> -> vector<24x512xf32>
    %c0_9 = arith.constant 0 : index
    %c0_10 = arith.constant 0 : index
    %12 = vector.load %arg5[%c0_9, %c0_10] : memref<1x512xf32, #tpu.memory_space<vmem>>, vector<1x512xf32>
    %13 = vector.broadcast %12 : vector<1x512xf32> to vector<24x512xf32>
    %14 = arith.addf %11, %13 : vector<24x512xf32>
    %cst_11 = arith.constant 0.000000e+00 : f32
    %15 = vector.broadcast %cst_11 : f32 to vector<24x512xf32>
    %16 = arith.maximumf %14, %15 : vector<24x512xf32>
    %17 = arith.truncf %16 : vector<24x512xf32> to vector<24x512xbf16>
    %c0_12 = arith.constant 0 : index
    %c0_13 = arith.constant 0 : index
    %18 = vector.load %arg6[%c0_12, %c0_13] : memref<512x512xbf16, #tpu.memory_space<vmem>>, vector<512x512xbf16>
    %cst_14 = arith.constant dense<0.000000e+00> : vector<24x512xf32>
    %19 = tpu.matmul %17, %18, %cst_14 {dimension_numbers = #tpu.dot_dimension_numbers<[1], [0], [0], [1], [0, 0, 1, 1], [], []>} : vector<24x512xbf16>, vector<512x512xbf16>, vector<24x512xf32> -> vector<24x512xf32>
    %c0_15 = arith.constant 0 : index
    %c0_16 = arith.constant 0 : index
    %20 = vector.load %arg7[%c0_15, %c0_16] : memref<1x512xf32, #tpu.memory_space<vmem>>, vector<1x512xf32>
    %21 = vector.broadcast %20 : vector<1x512xf32> to vector<24x512xf32>
    %22 = arith.addf %19, %21 : vector<24x512xf32>
    %cst_17 = arith.constant 0.000000e+00 : f32
    %23 = vector.broadcast %cst_17 : f32 to vector<24x512xf32>
    %24 = arith.maximumf %22, %23 : vector<24x512xf32>
    %25 = arith.truncf %24 : vector<24x512xf32> to vector<24x512xbf16>
    %c0_18 = arith.constant 0 : index
    %c0_19 = arith.constant 0 : index
    %26 = vector.load %arg8[%c0_18, %c0_19] : memref<512x128xbf16, #tpu.memory_space<vmem>>, vector<512x128xbf16>
    %cst_20 = arith.constant dense<0.000000e+00> : vector<24x128xf32>
    %27 = tpu.matmul %25, %26, %cst_20 {dimension_numbers = #tpu.dot_dimension_numbers<[1], [0], [0], [1], [0, 0, 1, 1], [], []>} : vector<24x512xbf16>, vector<512x128xbf16>, vector<24x128xf32> -> vector<24x128xf32>
    %c0_21 = arith.constant 0 : index
    %c0_22 = arith.constant 0 : index
    %28 = vector.load %arg9[%c0_21, %c0_22] : memref<1x128xf32, #tpu.memory_space<vmem>>, vector<1x128xf32>
    %29 = vector.broadcast %28 : vector<1x128xf32> to vector<24x128xf32>
    %30 = arith.addf %27, %29 : vector<24x128xf32>
    %cst_23 = arith.constant dense<0xFF800000> : vector<24xf32>
    %31 = vector.multi_reduction <maximumf>, %30, %cst_23 [1] : vector<24x128xf32> to vector<24xf32>
    %32 = vector.shape_cast %31 : vector<24xf32> to vector<24x1xf32>
    %33 = vector.broadcast %32 : vector<24x1xf32> to vector<24x128xf32>
    %34 = arith.subf %30, %33 : vector<24x128xf32>
    %35 = math.exp %34 : vector<24x128xf32>
    %cst_24 = arith.constant dense<0.000000e+00> : vector<24xf32>
    %36 = vector.multi_reduction <add>, %35, %cst_24 [1] : vector<24x128xf32> to vector<24xf32>
    %37 = vector.shape_cast %36 : vector<24xf32> to vector<24x1xf32>
    %38 = vector.broadcast %37 : vector<24x1xf32> to vector<24x128xf32>
    %39 = arith.divf %35, %38 : vector<24x128xf32>
    %40 = arith.truncf %39 : vector<24x128xf32> to vector<24x128xbf16>
    %c0_25 = arith.constant 0 : index
    %c0_26 = arith.constant 0 : index
    %41 = vector.load %arg10[%c0_25, %c0_26] : memref<24x128xbf16, #tpu.memory_space<vmem>>, vector<24x128xbf16>
    tpu.vector_store %arg10[%c0_25, %c0_26], %40 {strides = array<i32>} : memref<24x128xbf16, #tpu.memory_space<vmem>>, vector<24x128xbf16>,
    return
  }
  func.func @transform_0(%arg0: i32) -> (i32, i32) {
    %c0_i32 = arith.constant 0 : i32
    %c0_i32_0 = arith.constant 0 : i32
    return %arg0, %c0_i32 : i32, i32
  }
  func.func @transform_1(%arg0: i32) -> (i32, i32) {
    %c0_i32 = arith.constant 0 : i32
    %c0_i32_0 = arith.constant 0 : i32
    %c0_i32_1 = arith.constant 0 : i32
    return %c0_i32, %c0_i32_0 : i32, i32
  }
  func.func @transform_2(%arg0: i32) -> (i32, i32) {
    %c0_i32 = arith.constant 0 : i32
    %c0_i32_0 = arith.constant 0 : i32
    %c0_i32_1 = arith.constant 0 : i32
    return %c0_i32, %c0_i32_0 : i32, i32
  }
  func.func @transform_3(%arg0: i32) -> (i32, i32) {
    %c0_i32 = arith.constant 0 : i32
    %c0_i32_0 = arith.constant 0 : i32
    %c0_i32_1 = arith.constant 0 : i32
    return %c0_i32, %c0_i32_0 : i32, i32
  }
  func.func @transform_4(%arg0: i32) -> (i32, i32) {
    %c0_i32 = arith.constant 0 : i32
    %c0_i32_0 = arith.constant 0 : i32
    %c0_i32_1 = arith.constant 0 : i32
    return %c0_i32, %c0_i32_0 : i32, i32
  }
  func.func @transform_5(%arg0: i32) -> (i32, i32) {
    %c0_i32 = arith.constant 0 : i32
    %c0_i32_0 = arith.constant 0 : i32
    %c0_i32_1 = arith.constant 0 : i32
    return %c0_i32, %c0_i32_0 : i32, i32
  }
  func.func @transform_6(%arg0: i32) -> (i32, i32) {
    %c0_i32 = arith.constant 0 : i32
    %c0_i32_0 = arith.constant 0 : i32
    %c0_i32_1 = arith.constant 0 : i32
    return %c0_i32, %c0_i32_0 : i32, i32
  }
  func.func @transform_7(%arg0: i32) -> (i32, i32) {
    %c0_i32 = arith.constant 0 : i32
    %c0_i32_0 = arith.constant 0 : i32
    %c0_i32_1 = arith.constant 0 : i32
    return %c0_i32, %c0_i32_0 : i32, i32
  }
  func.func @transform_8(%arg0: i32) -> (i32, i32) {
    %c0_i32 = arith.constant 0 : i32
    %c0_i32_0 = arith.constant 0 : i32
    %c0_i32_1 = arith.constant 0 : i32
    return %c0_i32, %c0_i32_0 : i32, i32
  }
  func.func @transform_9(%arg0: i32) -> (i32, i32) {
    %c0_i32 = arith.constant 0 : i32
    %c0_i32_0 = arith.constant 0 : i32
    return %arg0, %c0_i32 : i32, i32
  }
}

</mosaic_0001>

<bundles_post_ra>
// kernel: actor_forward.1
= control target key start
LH: loop header
LB: loop body
LE: loop exit
PB: predicated region body
PF: predicated region fallthrough
CT: control target
= control target key end

     0   :  { %14 = vsyncpa [#allocation3], 0  ;;  %s4706_s0 = inlined_call_operand.vmem [shape: f32[24,8], index: 0, kind: input, shape index: {}]   ;;  %s4707_s1 = inlined_call_operand.vmem [shape: bf16[8,512], index: 1, kind: input, shape index: {}]   ;;  %s4708_s2 = inlined_call_operand.vmem [shape: f32[1,512], index: 2, kind: input, shape index: {}]   ;;  %s4709_s3 = inlined_call_operand.hbm [shape: bf16[512,512], index: 3, kind: input, shape index: {}]   ;;  %s4710_s4 = inlined_call_operand.vmem [shape: f32[1,512], index: 4, kind: input, shape index: {}]   ;;  %s4711_s5 = inlined_call_operand.hbm [shape: bf16[512,512], index: 5, kind: input, shape index: {}]   ;;  %s4712_s6 = inlined_call_operand.vmem [shape: f32[1,512], index: 6, kind: input, shape index: {}]   ;;  %s4713_s7 = inlined_call_operand.vmem [shape: bf16[512,128], index: 7, kind: input, shape index: {}]   ;;  %s4714_s8 = inlined_call_operand.vmem [shape: f32[1,128], index: 8, kind: input, shape index: {}]   ;;  %s4715_s9 = inlined_call_operand.vmem [shape: bf16[24,128], index: 9, kind: output, shape index: {}]  }
   0x1   :  { %s26_s11 = sshll.u32 %s4709_s3, 4  ;;  %s27_s11 = int_to_ptr.hbm [resolvable:$true] %s26_s11 }
   0x2   :  { %15 = vsyncpa [#allocation5], 0  ;;  %s4308_s12 = smov [#allocation2]   ;;  %s41_s16 = sshll.u32 %s4711_s5, 4  ;;  %s42_s16 = int_to_ptr.hbm [resolvable:$true] %s41_s16 }
   0x3   :  { %s28_s13 = sshll.u32 %s4308_s12, 4  ;;  %s4309_s17 = smov 256   ;;  %s29_s13 = int_to_ptr.vmem [resolvable:$true] %s28_s13 }
   0x4   :  { %s4310_s18 = smov 16   ;;  %s4311_s19 = smov [#allocation4]  }
   0x5   :  { %34 = dma.hbm_to_vmem [thread:$0]  %s27_s11, 16384, %s29_s13, [#allocation3], %s4309_s17, %s4309_s17, %s4310_s18  }
   0x6   :  { %s43_s20 = sshll.u32 %s4311_s19, 4  ;;  %s44_s20 = int_to_ptr.vmem [resolvable:$true] %s43_s20 }
   0x7   :  { %49 = dma.hbm_to_vmem [thread:$0]  %s42_s16, 16384, %s44_s20, [#allocation5], %s4309_s17, %s4309_s17, %s4310_s18  }
   0x8   :  { %4304 = dma.done.wait [#allocation3], 16384  }
   0x9   :  { %4305 = vsyncadd [#allocation3], 4294950912 }
   0xa   :  { %4306 = dma.done.wait [#allocation5], 16384  }
   0xb   :  { %4307 = vsyncadd [#allocation5], 4294950912  ;;  %v70_v0 = vld [vmem:[%s4707_s1] sm:$0xff]  ;;  %vm99_vm0 = vcmask 1043456   ;;  %v71_v1 = vld [vmem:[%s4707_s1 + $0x8] sm:$0xff]  ;;  %vm92_vm1 = vcmask 64512  }
   0xc   :  { %v84_v2 = vunpack.c.l.b16 %v70_v0  ;;  %v85_v3 = vunpack.c.h.b16 %v70_v0  ;;  %v86_v4 = vunpack.c.l.b16 %v71_v1  ;;  %v87_v5 = vunpack.c.h.b16 %v71_v1  ;;  %v65_v6 = vld [vmem:[%s4706_s0] sm:$0xff]  ;;  %v66_v7 = vld [vmem:[%s4706_s0 + $0x8] sm:$0xff]  ;;  %v3976_v9 = vld [vmem:[#allocation2 + $0xec] sm:$0xf0] }
   0xd   :  { %v2908_v8 = vld [vmem:[#allocation2 + $0xe0] sm:$0xf]  ;;  %v4008_v11 = vld [vmem:[#allocation2 + $0x1ec] sm:$0xf0]  ;;  %v68_v19 = vpack.c.bf16 %v66_v7, %v65_v6 }
   0xe   :  { %v3036_v10 = vld [vmem:[#allocation2 + $0x1e0] sm:$0xf]  ;;  %v88_v12 = vpack.c.b16 %v84_v2, %v84_v2  ;;  %v89_v13 = vpack.c.b16 %v85_v3, %v85_v3  ;;  %v90_v14 = vpack.c.b16 %v86_v4, %v86_v4  ;;  %v91_v15 = vpack.c.b16 %v87_v5, %v87_v5  ;;  %v3972_v17 = vld [vmem:[#allocation2 + $0xcc] sm:$0xf0] }
   0xf   :  { %v2892_v16 = vld [vmem:[#allocation2 + $0xc0] sm:$0xf]  ;;  %v2909_v20 = vor.u32 %v3976_v9, %v2908_v8  ;;  %v3037_v21 = vor.u32 %v4008_v11, %v3036_v10  ;;  %v4004_v22 = vld [vmem:[#allocation2 + $0x1cc] sm:$0xf0] }
  0x10   :  { %v3020_v18 = vld [vmem:[#allocation2 + $0x1c0] sm:$0xf]  ;;  %v4040_v24 = vld [vmem:[#allocation2 + $0x2ec] sm:$0xf0]  ;;  %v101_v25 = vsel %vm99_vm0, %v88_v12, 0  ;;  %v104_v26 = vsel %vm99_vm0, %v89_v13, 0  ;;  %v2893_v35 = vor.u32 %v3972_v17, %v2892_v16 }
  0x11   :  { %v3164_v23 = vld [vmem:[#allocation2 + $0x2e0] sm:$0xf]  ;;  %v107_v27 = vsel %vm99_vm0, %v90_v14, 0  ;;  %v110_v28 = vsel %vm99_vm0, %v91_v15, 0  ;;  %119 = vmatpush.bf16.msra.mxu0 %v101_v25  ;;  %137 = vmatpush.bf16.msra.mxu1 %v104_v26  ;;  %v4072_v30 = vld [vmem:[#allocation2 + $0x3ec] sm:$0xf0]  ;;  %v3021_v36 = vor.u32 %v4004_v22, %v3020_v18 }
  0x12   :  { %v3292_v29 = vld [vmem:[#allocation2 + $0x3e0] sm:$0xf]  ;;  %155 = vmatpush.bf16.msra.mxu2 %v107_v27  ;;  %173 = vmatpush.bf16.msra.mxu3 %v110_v28  ;;  %v3165_v31 = vor.u32 %v4040_v24, %v3164_v23  ;;  %v4036_v37 = vld [vmem:[#allocation2 + $0x2cc] sm:$0xf0] }
  0x13   :  { %v3293_v32 = vor.u32 %v4072_v30, %v3292_v29  ;;  %v2876_v33 = vld [vmem:[#allocation2 + $0xa0] sm:$0xf]  ;;  %v4068_v39 = vld [vmem:[#allocation2 + $0x3cc] sm:$0xf0] }
  0x14   :  { %v3148_v34 = vld [vmem:[#allocation2 + $0x2c0] sm:$0xf]  ;;  %2786 = vmatmul.msk.bf16.vlgmr.msra.gmra.mxu0 %vm92_vm1, %v68_v19  ;;  %2788 = vmatmul.msk.bf16.vlgmr.msra.gmra.mxu1 %vm92_vm1, %v68_v19  ;;  %v3968_v40 = vld [vmem:[#allocation2 + $0xac] sm:$0xf0] }
  0x15   :  { %982 = vmatpush.bf16.msrb.mxu0 %v2909_v20  ;;  %1000 = vmatpush.bf16.msrb.mxu1 %v3037_v21  ;;  %v3276_v38 = vld [vmem:[#allocation2 + $0x3c0] sm:$0xf]  ;;  %v4000_v42 = vld [vmem:[#allocation2 + $0x1ac] sm:$0xf0]  ;;  %v3149_v43 = vor.u32 %v4036_v37, %v3148_v34  ;;  %v2877_v48 = vor.u32 %v3968_v40, %v2876_v33 }
  0x16   :  { %v3004_v41 = vld [vmem:[#allocation2 + $0x1a0] sm:$0xf]  ;;  %2790 = vmatmul.msk.bf16.vlgmr.msra.gmra.mxu2 %vm92_vm1, %v68_v19  ;;  %2792 = vmatmul.msk.bf16.vlgmr.msra.gmra.mxu3 %vm92_vm1, %v68_v19  ;;  %v3277_v44 = vor.u32 %v4068_v39, %v3276_v38  ;;  %v4032_v47 = vld [vmem:[#allocation2 + $0x2ac] sm:$0xf0] }
  0x17   :  { %1018 = vmatpush.bf16.msrb.mxu2 %v3165_v31  ;;  %1036 = vmatpush.bf16.msrb.mxu3 %v3293_v32  ;;  %v2860_v45 = vld [vmem:[#allocation2 + $0x80] sm:$0xf]  ;;  %v3005_v49 = vor.u32 %v4000_v42, %v3004_v41  ;;  %v4064_v51 = vld [vmem:[#allocation2 + $0x3ac] sm:$0xf0] }
  0x18   :  { %v3132_v46 = vld [vmem:[#allocation2 + $0x2a0] sm:$0xf]  ;;  %v3964_v52 = vld [vmem:[#allocation2 + $0x8c] sm:$0xf0] }
  0x19   :  { %983 = vmatpush.bf16.msrb.mxu0 %v2893_v35  ;;  %1001 = vmatpush.bf16.msrb.mxu1 %v3021_v36  ;;  %v3260_v50 = vld [vmem:[#allocation2 + $0x3a0] sm:$0xf]  ;;  %v3996_v54 = vld [vmem:[#allocation2 + $0x18c] sm:$0xf0]  ;;  %v3133_v55 = vor.u32 %v4032_v47, %v3132_v46  ;;  %v2861_v57 = vor.u32 %v3964_v52, %v2860_v45  ;;  %v3974_v45 = vld [vmem:[#allocation2 + $0xe4] sm:$0xf] }
  0x1a   :  { %v2988_v53 = vld [vmem:[#allocation2 + $0x180] sm:$0xf]  ;;  %v3261_v56 = vor.u32 %v4064_v51, %v3260_v50  ;;  %v67_v59 = vld [vmem:[%s4706_s0 + $0x10] sm:$0xff]  ;;  %v4006_v47 = vld [vmem:[#allocation2 + $0x1e4] sm:$0xf] }
  0x1b   :  { %1019 = vmatpush.bf16.msrb.mxu2 %v3149_v43  ;;  %1037 = vmatpush.bf16.msrb.mxu3 %v3277_v44  ;;  %v2989_v58 = vor.u32 %v3996_v54, %v2988_v53  ;;  %v69_v60 = vpack.c.bf16 %v67_v59, %v67_v59  ;;  %v2844_v61 = vld [vmem:[#allocation2 + $0x60] sm:$0xf]  ;;  %v3960_v62 = vld [vmem:[#allocation2 + $0x6c] sm:$0xf0]  ;;  %v2910_v46 = vld [vmem:[#allocation2 + $0xf0] sm:$0xf0] }
  0x1c   :  { %v2972_v63 = vld [vmem:[#allocation2 + $0x160] sm:$0xf]  ;;  %v2845_v0 = vor.u32 %v3960_v62, %v2844_v61  ;;  %v3992_v1 = vld [vmem:[#allocation2 + $0x16c] sm:$0xf0]  ;;  %v4002_v59 = vld [vmem:[#allocation2 + $0x1c4] sm:$0xf] }
  0x1d   :  { %984 = vmatpush.bf16.msrb.mxu0 %v2877_v48  ;;  %1002 = vmatpush.bf16.msrb.mxu1 %v3005_v49  ;;  %v2973_v2 = vor.u32 %v3992_v1, %v2972_v63  ;;  %v3116_v3 = vld [vmem:[#allocation2 + $0x280] sm:$0xf]  ;;  %v4028_v4 = vld [vmem:[#allocation2 + $0x28c] sm:$0xf0]  ;;  %v2913_v48 = vor.u32 %v3974_v45, %v2910_v46  ;;  %v3038_v49 = vld [vmem:[#allocation2 + $0x1f0] sm:$0xf0] }
  0x1e   :  { %v3244_v5 = vld [vmem:[#allocation2 + $0x380] sm:$0xf]  ;;  %v3117_v6 = vor.u32 %v4028_v4, %v3116_v3  ;;  %v4060_v7 = vld [vmem:[#allocation2 + $0x38c] sm:$0xf0]  ;;  %v3041_v50 = vor.u32 %v4006_v47, %v3038_v49  ;;  %v3022_v61 = vld [vmem:[#allocation2 + $0x1d0] sm:$0xf0] }
  0x1f   :  { %1020 = vmatpush.bf16.msrb.mxu2 %v3133_v55  ;;  %1038 = vmatpush.bf16.msrb.mxu3 %v3261_v56  ;;  %v3245_v8 = vor.u32 %v4060_v7, %v3244_v5  ;;  %v2828_v9 = vld [vmem:[#allocation2 + $0x40] sm:$0xf]  ;;  %v3956_v10 = vld [vmem:[#allocation2 + $0x4c] sm:$0xf0]  ;;  %v3025_v62 = vor.u32 %v4002_v59, %v3022_v61  ;;  %v4038_v63 = vld [vmem:[#allocation2 + $0x2e4] sm:$0xf] }
  0x20   :  { %v2956_v11 = vld [vmem:[#allocation2 + $0x140] sm:$0xf]  ;;  %v2829_v12 = vor.u32 %v3956_v10, %v2828_v9  ;;  %v3988_v13 = vld [vmem:[#allocation2 + $0x14c] sm:$0xf0]  ;;  %v4070_v1 = vld [vmem:[#allocation2 + $0x3e4] sm:$0xf] }
  0x21   :  { %985 = vmatpush.bf16.msrb.mxu0 %v2861_v57  ;;  %1003 = vmatpush.bf16.msrb.mxu1 %v2989_v58  ;;  %v3100_v14 = vld [vmem:[#allocation2 + $0x260] sm:$0xf]  ;;  %v2957_v15 = vor.u32 %v3988_v13, %v2956_v11  ;;  %v4024_v16 = vld [vmem:[#allocation2 + $0x26c] sm:$0xf0]  ;;  %v3970_v57 = vld [vmem:[#allocation2 + $0xc4] sm:$0xf] }
  0x22   :  { %v3228_v17 = vld [vmem:[#allocation2 + $0x360] sm:$0xf]  ;;  %v4056_v18 = vld [vmem:[#allocation2 + $0x36c] sm:$0xf0]  ;;  %v3101_v19 = vor.u32 %v4024_v16, %v3100_v14  ;;  %v2894_v58 = vld [vmem:[#allocation2 + $0xd0] sm:$0xf0] }
  0x23   :  { %1021 = vmatpush.bf16.msrb.mxu2 %v3117_v6  ;;  %1039 = vmatpush.bf16.msrb.mxu3 %v3245_v8  ;;  %v3229_v20 = vor.u32 %v4056_v18, %v3228_v17  ;;  %v2812_v21 = vld [vmem:[#allocation2 + $0x20] sm:$0xf]  ;;  %v3952_v22 = vld [vmem:[#allocation2 + $0x2c] sm:$0xf0]  ;;  %v3294_v3 = vld [vmem:[#allocation2 + $0x3f0] sm:$0xf0] }
  0x24   :  { %2787 = vmatmul.msk.bf16.gmra.mxu0 %vm92_vm1, %v69_v60  ;;  %2789 = vmatmul.msk.bf16.gmra.mxu1 %vm92_vm1, %v69_v60  ;;  %v2940_v23 = vld [vmem:[#allocation2 + $0x120] sm:$0xf]  ;;  %v2813_v24 = vor.u32 %v3952_v22, %v2812_v21  ;;  %v3984_v25 = vld [vmem:[#allocation2 + $0x12c] sm:$0xf0]  ;;  %v3297_v4 = vor.u32 %v4070_v1, %v3294_v3  ;;  %v3966_v5 = vld [vmem:[#allocation2 + $0xa4] sm:$0xf] }
  0x25   :  { %986 = vmatpush.bf16.msrb.mxu0 %v2845_v0  ;;  %1004 = vmatpush.bf16.msrb.mxu1 %v2973_v2  ;;  %v2941_v26 = vor.u32 %v3984_v25, %v2940_v23  ;;  %v3084_v27 = vld [vmem:[#allocation2 + $0x240] sm:$0xf]  ;;  %v4020_v28 = vld [vmem:[#allocation2 + $0x24c] sm:$0xf0]  ;;  %v3166_v0 = vld [vmem:[#allocation2 + $0x2f0] sm:$0xf0] }
  0x26   :  { %2791 = vmatmul.msk.bf16.gmra.mxu2 %vm92_vm1, %v69_v60  ;;  %2793 = vmatmul.msk.bf16.gmra.mxu3 %vm92_vm1, %v69_v60  ;;  %v3085_v29 = vor.u32 %v4020_v28, %v3084_v27  ;;  %v3212_v30 = vld [vmem:[#allocation2 + $0x340] sm:$0xf]  ;;  %v4052_v31 = vld [vmem:[#allocation2 + $0x34c] sm:$0xf0]  ;;  %v2897_v60 = vor.u32 %v3970_v57, %v2894_v58  ;;  %v3169_v2 = vor.u32 %v4038_v63, %v3166_v0  ;;  %v2878_v6 = vld [vmem:[#allocation2 + $0xb0] sm:$0xf0] }
  0x27   :  { %1022 = vmatpush.bf16.msrb.mxu2 %v3101_v19  ;;  %1040 = vmatpush.bf16.msrb.mxu3 %v3229_v20  ;;  %v3213_v32 = vor.u32 %v4052_v31, %v3212_v30  ;;  %v2796_v33 = vld [vmem:[#allocation2] sm:$0xf]  ;;  %v3948_v34 = vld [vmem:[#allocation2 + $0xc] sm:$0xf0]  ;;  %v3998_v7 = vld [vmem:[#allocation2 + $0x1a4] sm:$0xf]  ;;  %v2881_v8 = vor.u32 %v3966_v5, %v2878_v6 }
  0x28   :  { %v2924_v35 = vld [vmem:[#allocation2 + $0x100] sm:$0xf]  ;;  %v2797_v36 = vor.u32 %v3948_v34, %v2796_v33  ;;  %v3980_v37 = vld [vmem:[#allocation2 + $0x10c] sm:$0xf0]  ;;  %v3006_v9 = vld [vmem:[#allocation2 + $0x1b0] sm:$0xf0] }
  0x29   :  { %987 = vmatpush.bf16.msrb.mxu0 %v2829_v12  ;;  %1005 = vmatpush.bf16.msrb.mxu1 %v2957_v15  ;;  %v2925_v38 = vor.u32 %v3980_v37, %v2924_v35  ;;  %v3068_v39 = vld [vmem:[#allocation2 + $0x220] sm:$0xf]  ;;  %v4016_v40 = vld [vmem:[#allocation2 + $0x22c] sm:$0xf0]  ;;  %v3009_v10 = vor.u32 %v3998_v7, %v3006_v9  ;;  %v4034_v11 = vld [vmem:[#allocation2 + $0x2c4] sm:$0xf] }
  0x2a   :  { %v3196_v41 = vld [vmem:[#allocation2 + $0x320] sm:$0xf]  ;;  %v3069_v42 = vor.u32 %v4016_v40, %v3068_v39  ;;  %v4048_v43 = vld [vmem:[#allocation2 + $0x32c] sm:$0xf0]  ;;  %v3150_v12 = vld [vmem:[#allocation2 + $0x2d0] sm:$0xf0] }
  0x2b   :  { %1023 = vmatpush.bf16.msrb.mxu2 %v3085_v29  ;;  %1041 = vmatpush.bf16.msrb.mxu3 %v3213_v32  ;;  %v3197_v44 = vor.u32 %v4048_v43, %v3196_v41  ;;  %v3052_v51 = vld [vmem:[#allocation2 + $0x200] sm:$0xf]  ;;  %v4012_v52 = vld [vmem:[#allocation2 + $0x20c] sm:$0xf0]  ;;  %v4066_v13 = vld [vmem:[#allocation2 + $0x3c4] sm:$0xf]  ;;  %v3153_v14 = vor.u32 %v4034_v11, %v3150_v12 }
  0x2c   :  { %v3180_v53 = vld [vmem:[#allocation2 + $0x300] sm:$0xf]  ;;  %v3053_v54 = vor.u32 %v4012_v52, %v3052_v51  ;;  %v4044_v55 = vld [vmem:[#allocation2 + $0x30c] sm:$0xf0]  ;;  %v3278_v15 = vld [vmem:[#allocation2 + $0x3d0] sm:$0xf0] }
  0x2d   :  { %988 = vmatpush.bf16.msrb.mxu0 %v2813_v24  ;;  %1006 = vmatpush.bf16.msrb.mxu1 %v2941_v26  ;;  %v3181_v56 = vor.u32 %v4044_v55, %v3180_v53  ;;  %v3281_v16 = vor.u32 %v4066_v13, %v3278_v15  ;;  %v3962_v17 = vld [vmem:[#allocation2 + $0x84] sm:$0xf]  ;;  %v2862_v18 = vld [vmem:[#allocation2 + $0x90] sm:$0xf0]  ;;  %v4398_v20 = vld [vmem:[%s4708_s2] sm:$0xf] }
  0x2e   :  { %v3994_v19 = vld [vmem:[#allocation2 + $0x184] sm:$0xf]  ;;  %v2865_v21 = vor.u32 %v3962_v17, %v2862_v18  ;;  %v2990_v22 = vld [vmem:[#allocation2 + $0x190] sm:$0xf0]  ;;  %v4401_v27 = vperm.slane %v4398_v20, 0  ;;  %v4404_v28 = vperm.slane %v4398_v20, 1 }
  0x2f   :  { %1024 = vmatpush.bf16.msrb.mxu2 %v3069_v42  ;;  %1042 = vmatpush.bf16.msrb.mxu3 %v3197_v44  ;;  %v2993_v23 = vor.u32 %v3994_v19, %v2990_v22  ;;  %v4030_v24 = vld [vmem:[#allocation2 + $0x2a4] sm:$0xf]  ;;  %v3134_v25 = vld [vmem:[#allocation2 + $0x2b0] sm:$0xf0]  ;;  %v4415_v59 = vperm.slane %v4398_v20, 2 }
  0x30   :  { %v4062_v26 = vld [vmem:[#allocation2 + $0x3a4] sm:$0xf]  ;;  %v3137_v29 = vor.u32 %v4030_v24, %v3134_v25  ;;  %v3262_v30 = vld [vmem:[#allocation2 + $0x3b0] sm:$0xf0] }
  0x31   :  { %989 = vmatpush.bf16.msrb.mxu0 %v2797_v36  ;;  %1007 = vmatpush.bf16.msrb.mxu1 %v2925_v38  ;;  %v3265_v31 = vor.u32 %v4062_v26, %v3262_v30  ;;  %v3958_v32 = vld [vmem:[#allocation2 + $0x64] sm:$0xf]  ;;  %v2846_v33 = vld [vmem:[#allocation2 + $0x70] sm:$0xf0] }
  0x32   :  { %v3990_v34 = vld [vmem:[#allocation2 + $0x164] sm:$0xf]  ;;  %v2849_v35 = vor.u32 %v3958_v32, %v2846_v33  ;;  %v2974_v36 = vld [vmem:[#allocation2 + $0x170] sm:$0xf0] }
  0x33   :  { %1025 = vmatpush.bf16.msrb.mxu2 %v3053_v54  ;;  %1043 = vmatpush.bf16.msrb.mxu3 %v3181_v56  ;;  %v4026_v37 = vld [vmem:[#allocation2 + $0x284] sm:$0xf]  ;;  %v3118_v38 = vld [vmem:[#allocation2 + $0x290] sm:$0xf0]  ;;  %v2977_v41 = vor.u32 %v3990_v34, %v2974_v36 }
  0x34   :  { %v3121_v42 = vor.u32 %v4026_v37, %v3118_v38  ;;  %v4058_v43 = vld [vmem:[#allocation2 + $0x384] sm:$0xf]  ;;  %v3246_v44 = vld [vmem:[#allocation2 + $0x390] sm:$0xf0] }
  0x35   :  { %1054 = vmatpush.bf16.msra.mxu0 %v2913_v48  ;;  %1072 = vmatpush.bf16.msra.mxu1 %v3041_v50  ;;  %v3954_v45 = vld [vmem:[#allocation2 + $0x44] sm:$0xf]  ;;  %v3249_v48 = vor.u32 %v4058_v43, %v3246_v44  ;;  %v2830_v49 = vld [vmem:[#allocation2 + $0x50] sm:$0xf0] }
  0x36   :  { %v3986_v50 = vld [vmem:[#allocation2 + $0x144] sm:$0xf]  ;;  %v2958_v51 = vld [vmem:[#allocation2 + $0x150] sm:$0xf0]  ;;  %v2833_v52 = vor.u32 %v3954_v45, %v2830_v49  ;;  %v4009_v45 = vld [vmem:[#allocation2 + $0x1f4] sm:$0xf0] }
  0x37   :  { %1090 = vmatpush.bf16.msra.mxu2 %v3169_v2  ;;  %1108 = vmatpush.bf16.msra.mxu3 %v3297_v4  ;;  %v2961_v53 = vor.u32 %v3986_v50, %v2958_v51  ;;  %v4022_v54 = vld [vmem:[#allocation2 + $0x264] sm:$0xf]  ;;  %v3102_v55 = vld [vmem:[#allocation2 + $0x270] sm:$0xf0] }
  0x38   :  { %v4054_v56 = vld [vmem:[#allocation2 + $0x364] sm:$0xf]  ;;  %v3230_v61 = vld [vmem:[#allocation2 + $0x370] sm:$0xf0] }
  0x39   :  { %1055 = vmatpush.bf16.msra.mxu0 %v2897_v60  ;;  %1073 = vmatpush.bf16.msra.mxu1 %v3025_v62  ;;  %v3105_v60 = vor.u32 %v4022_v54, %v3102_v55  ;;  %v3233_v62 = vor.u32 %v4054_v56, %v3230_v61  ;;  %v3950_v63 = vld [vmem:[#allocation2 + $0x24] sm:$0xf]  ;;  %v2814_v0 = vld [vmem:[#allocation2 + $0x30] sm:$0xf0]  ;;  %v2900_v55 = vld [vmem:[#allocation2 + $0xc8] sm:$0xf] }
  0x3a   :  { %v3982_v1 = vld [vmem:[#allocation2 + $0x124] sm:$0xf]  ;;  %v2817_v4 = vor.u32 %v3950_v63, %v2814_v0  ;;  %v2942_v5 = vld [vmem:[#allocation2 + $0x130] sm:$0xf0]  ;;  %v3973_v61 = vld [vmem:[#allocation2 + $0xd4] sm:$0xf0] }
  0x3b   :  { %1091 = vmatpush.bf16.msra.mxu2 %v3153_v14  ;;  %1109 = vmatpush.bf16.msra.mxu3 %v3281_v16  ;;  %v4018_v6 = vld [vmem:[#allocation2 + $0x244] sm:$0xf]  ;;  %v3086_v7 = vld [vmem:[#allocation2 + $0x250] sm:$0xf0]  ;;  %v4005_v63 = vld [vmem:[#allocation2 + $0x1d4] sm:$0xf0] }
  0x3c   :  { %v3089_v11 = vor.u32 %v4018_v6, %v3086_v7  ;;  %v4050_v12 = vld [vmem:[#allocation2 + $0x344] sm:$0xf]  ;;  %v3214_v13 = vld [vmem:[#allocation2 + $0x350] sm:$0xf0]  ;;  %v3300_v7 = vld [vmem:[#allocation2 + $0x3e8] sm:$0xf] }
  0x3d   :  { %1056 = vmatpush.bf16.msra.mxu0 %v2881_v8  ;;  %1074 = vmatpush.bf16.msra.mxu1 %v3009_v10  ;;  %v2945_v10 = vor.u32 %v3982_v1, %v2942_v5  ;;  %v3946_v14 = vld [vmem:[#allocation2 + $0x4] sm:$0xf]  ;;  %v3217_v18 = vor.u32 %v4050_v12, %v3214_v13  ;;  %v2798_v19 = vld [vmem:[#allocation2 + $0x10] sm:$0xf0]  ;;  %v2884_v13 = vld [vmem:[#allocation2 + $0xa8] sm:$0xf] }
  0x3e   :  { %v2926_v22 = vld [vmem:[#allocation2 + $0x110] sm:$0xf0]  ;;  %v2801_v24 = vor.u32 %v3946_v14, %v2798_v19  ;;  %v4014_v26 = vld [vmem:[#allocation2 + $0x224] sm:$0xf]  ;;  %v3969_v14 = vld [vmem:[#allocation2 + $0xb4] sm:$0xf0] }
  0x3f   :  { %1092 = vmatpush.bf16.msra.mxu2 %v3137_v29  ;;  %1110 = vmatpush.bf16.msra.mxu3 %v3265_v31  ;;  %v3070_v29 = vld [vmem:[#allocation2 + $0x230] sm:$0xf0]  ;;  %v4046_v32 = vld [vmem:[#allocation2 + $0x324] sm:$0xf]  ;;  %v4001_v19 = vld [vmem:[#allocation2 + $0x1b4] sm:$0xf0] }
  0x40   :  { %v3198_v33 = vld [vmem:[#allocation2 + $0x330] sm:$0xf0]  ;;  %v3073_v34 = vor.u32 %v4014_v26, %v3070_v29 }
  0x41   :  { %1057 = vmatpush.bf16.msra.mxu0 %v2865_v21  ;;  %1075 = vmatpush.bf16.msra.mxu1 %v2993_v23  ;;  %v3978_v21 = vld [vmem:[#allocation2 + $0x104] sm:$0xf]  ;;  %v4423_v23 = vperm.slane %v4398_v20, 3  ;;  %v3182_v54 = vld [vmem:[#allocation2 + $0x310] sm:$0xf0] }
  0x42   :  { %v2929_v25 = vor.u32 %v3978_v21, %v2926_v22  ;;  %v3156_v21 = vld [vmem:[#allocation2 + $0x2c8] sm:$0xf]  ;;  %v4037_v22 = vld [vmem:[#allocation2 + $0x2d4] sm:$0xf0] }
  0x43   :  { %1093 = vmatpush.bf16.msra.mxu2 %v3121_v42  ;;  %1111 = vmatpush.bf16.msra.mxu3 %v3249_v48  ;;  %v3157_v29 = vor.u32 %v4037_v22, %v3156_v21  ;;  %v3092_v21 = vld [vmem:[#allocation2 + $0x248] sm:$0xf]  ;;  %v4021_v22 = vld [vmem:[#allocation2 + $0x254] sm:$0xf0] }
  0x45   :  { %1058 = vmatpush.bf16.msra.mxu0 %v2849_v35  ;;  %1076 = vmatpush.bf16.msra.mxu1 %v2977_v41  ;;  %v3201_v35 = vor.u32 %v4046_v32, %v3198_v33  ;;  %v3044_v41 = vld [vmem:[#allocation2 + $0x1e8] sm:$0xf] }
  0x46   :  { %v2868_v32 = vld [vmem:[#allocation2 + $0x88] sm:$0xf] }
  0x47   :  { %1094 = vmatpush.bf16.msra.mxu2 %v3105_v60  ;;  %1112 = vmatpush.bf16.msra.mxu3 %v3233_v62  ;;  %v3028_v62 = vld [vmem:[#allocation2 + $0x1c8] sm:$0xf] }
  0x49   :  { %1059 = vmatpush.bf16.msra.mxu0 %v2833_v52  ;;  %1077 = vmatpush.bf16.msra.mxu1 %v2961_v53  ;;  %v3045_v52 = vor.u32 %v4009_v45, %v3044_v41  ;;  %v4042_v53 = vld [vmem:[#allocation2 + $0x304] sm:$0xf]  ;;  %v3140_v41 = vld [vmem:[#allocation2 + $0x2a8] sm:$0xf] }
  0x4a   :  { %v3185_v60 = vor.u32 %v4042_v53, %v3182_v54  ;;  %v3268_v45 = vld [vmem:[#allocation2 + $0x3a8] sm:$0xf] }
  0x4b   :  { %1095 = vmatpush.bf16.msra.mxu2 %v3089_v11  ;;  %1113 = vmatpush.bf16.msra.mxu3 %v3217_v18  ;;  %v4073_v11 = vld [vmem:[#allocation2 + $0x3f4] sm:$0xf0]  ;;  %v2885_v18 = vor.u32 %v3969_v14, %v2884_v13 }
  0x4c   :  { %v3301_v12 = vor.u32 %v4073_v11, %v3300_v7  ;;  %v3236_v11 = vld [vmem:[#allocation2 + $0x368] sm:$0xf]  ;;  %v4057_v13 = vld [vmem:[#allocation2 + $0x374] sm:$0xf0] }
  0x4d   :  { %1060 = vmatpush.bf16.msra.mxu0 %v2817_v4  ;;  %1078 = vmatpush.bf16.msra.mxu1 %v2945_v10  ;;  %v3029_v4 = vor.u32 %v4005_v63, %v3028_v62  ;;  %v3252_v62 = vld [vmem:[#allocation2 + $0x388] sm:$0xf]  ;;  %v4061_v63 = vld [vmem:[#allocation2 + $0x394] sm:$0xf0]  ;;  %v3237_v14 = vor.u32 %v4057_v13, %v3236_v11  ;;  %v3014_v11 = vld [vmem:[#allocation2 + $0x1b8] sm:$0xf0] }
  0x4e   :  { %v3158_v13 = vld [vmem:[#allocation2 + $0x2d8] sm:$0xf0] }
  0x4f   :  { %1096 = vmatpush.bf16.msra.mxu2 %v3073_v34  ;;  %1114 = vmatpush.bf16.msra.mxu3 %v3201_v35 }
  0x51   :  { %1061 = vmatpush.bf16.msra.mxu0 %v2801_v24  ;;  %1079 = vmatpush.bf16.msra.mxu1 %v2929_v25 }
  0x53   :  { %1115 = vmatpush.bf16.msra.mxu3 %v3185_v60 }
  0x91   :  { %v121_v39 = vpop.f32.mrf.mxu0  ;;  %v139_v40 = vpop.f32.mrf.mxu1 }
  0x92   :  { %v4407_v46 = vadd.f32 %v121_v39, %v4401_v27  ;;  %v4410_v47 = vadd.f32 %v139_v40, %v4404_v28  ;;  %v2916_v39 = vld [vmem:[#allocation2 + $0xe8] sm:$0xf]  ;;  %v3977_v40 = vld [vmem:[#allocation2 + $0xf4] sm:$0xf0] }
  0x93   :  { %v2917_v44 = vor.u32 %v3977_v40, %v2916_v39  ;;  %v3997_v39 = vld [vmem:[#allocation2 + $0x194] sm:$0xf0] }
  0x94   :  { %v184_v57 = vmax.f32 %v4407_v46, 0.0  ;;  %v185_v58 = vmax.f32 %v4410_v47, 0.0  ;;  %v4010_v46 = vld [vmem:[#allocation2 + $0x204] sm:$0xf]  ;;  %v3054_v47 = vld [vmem:[#allocation2 + $0x210] sm:$0xf0] }
  0x99   :  { %v157_v2 = vpop.f32.mrf.mxu2  ;;  %v175_v3 = vpop.f32.mrf.mxu3 }
  0x9a   :  { %v123_v8 = vpop.f32.mrf.mxu0  ;;  %v141_v9 = vpop.f32.mrf.mxu1  ;;  %v4418_v15 = vadd.f32 %v157_v2, %v4415_v59  ;;  %v176_v20 = vadd.f32 %v175_v3, %v4423_v23  ;;  %v2901_v3 = vor.u32 %v3973_v61, %v2900_v55 }
  0x9b   :  { %v124_v16 = vadd.f32 %v123_v8, %v4401_v27  ;;  %v142_v17 = vadd.f32 %v141_v9, %v4404_v28 }
  0x9c   :  { %v186_v36 = vmax.f32 %v4418_v15, 0.0  ;;  %v187_v0 = vmax.f32 %v176_v20, 0.0  ;;  %v3012_v15 = vld [vmem:[#allocation2 + $0x1a8] sm:$0xf] }
  0x9d   :  { %v188_v30 = vmax.f32 %v124_v16, 0.0  ;;  %v189_v31 = vmax.f32 %v142_v17, 0.0  ;;  %v3013_v26 = vor.u32 %v4001_v19, %v3012_v15  ;;  %v2996_v20 = vld [vmem:[#allocation2 + $0x188] sm:$0xf]  ;;  %v3985_v19 = vld [vmem:[#allocation2 + $0x134] sm:$0xf0] }
  0x9e   :  { %v2820_v15 = vld [vmem:[#allocation2 + $0x28] sm:$0xf] }
  0x9f   :  { %v4426_v37 = vpack.c.bf16 %v188_v30, %v184_v57  ;;  %v4428_v38 = vpack.c.bf16 %v189_v31, %v185_v58  ;;  %v3057_v58 = vor.u32 %v4010_v46, %v3054_v47  ;;  %v3284_v30 = vld [vmem:[#allocation2 + $0x3c8] sm:$0xf]  ;;  %v4069_v31 = vld [vmem:[#allocation2 + $0x3d4] sm:$0xf0] }
  0xa0   :  { %v3285_v35 = vor.u32 %v4069_v31, %v3284_v30  ;;  %v4065_v46 = vld [vmem:[#allocation2 + $0x3b4] sm:$0xf0]  ;;  %v2804_v30 = vld [vmem:[#allocation2 + $0x8] sm:$0xf] }
  0xa1   :  { %v159_v42 = vpop.f32.mrf.mxu2  ;;  %v177_v43 = vpop.f32.mrf.mxu3  ;;  %990 = vmatmul.bf16.vlgmr.msrb.gmra.mxu0 %v4426_v37  ;;  %1008 = vmatmul.bf16.vlgmr.msrb.gmra.mxu1 %v4428_v38 }
  0xa2   :  { %v160_v48 = vadd.f32 %v159_v42, %v4415_v59  ;;  %v178_v49 = vadd.f32 %v177_v43, %v4423_v23  ;;  %v126_v50 = vpop.f32.mrf.mxu0  ;;  %v144_v51 = vpop.f32.mrf.mxu1  ;;  %1126 = vmatpush.bf16.msrb.mxu0 %v2917_v44  ;;  %1144 = vmatpush.bf16.msrb.mxu1 %v3045_v52  ;;  %v4033_v42 = vld [vmem:[#allocation2 + $0x2b4] sm:$0xf0]  ;;  %v2980_v52 = vld [vmem:[#allocation2 + $0x168] sm:$0xf] }
  0xa3   :  { %v127_v56 = vadd.f32 %v126_v50, %v4401_v27  ;;  %v145_v57 = vadd.f32 %v144_v51, %v4404_v28  ;;  %1097 = vmatpush.bf16.msra.mxu2 %v3057_v58  ;;  %v3172_v27 = vld [vmem:[#allocation2 + $0x2e8] sm:$0xf]  ;;  %v4041_v28 = vld [vmem:[#allocation2 + $0x2f4] sm:$0xf0]  ;;  %v3141_v47 = vor.u32 %v4033_v42, %v3140_v41 }
  0xa4   :  { %v190_v1 = vmax.f32 %v160_v48, 0.0  ;;  %v191_v2 = vmax.f32 %v178_v49, 0.0  ;;  %v3173_v10 = vor.u32 %v4041_v28, %v3172_v27  ;;  %v3269_v49 = vor.u32 %v4065_v46, %v3268_v45  ;;  %v2852_v50 = vld [vmem:[#allocation2 + $0x68] sm:$0xf]  ;;  %v3961_v51 = vld [vmem:[#allocation2 + $0x74] sm:$0xf0] }
  0xa5   :  { %v192_v8 = vmax.f32 %v127_v56, 0.0  ;;  %v193_v9 = vmax.f32 %v145_v57, 0.0  ;;  %v2853_v55 = vor.u32 %v3961_v51, %v2852_v50  ;;  %v3993_v56 = vld [vmem:[#allocation2 + $0x174] sm:$0xf0]  ;;  %v3124_v57 = vld [vmem:[#allocation2 + $0x288] sm:$0xf] }
  0xa6   :  { %v4437_v5 = vpack.c.bf16 %v190_v1, %v186_v36  ;;  %v4439_v6 = vpack.c.bf16 %v191_v2, %v187_v0  ;;  %1127 = vmatpush.bf16.msrb.mxu0 %v2901_v3  ;;  %1145 = vmatpush.bf16.msrb.mxu1 %v3029_v4  ;;  %v3965_v36 = vld [vmem:[#allocation2 + $0x94] sm:$0xf0]  ;;  %v2981_v60 = vor.u32 %v3993_v56, %v2980_v52  ;;  %v2836_v0 = vld [vmem:[#allocation2 + $0x48] sm:$0xf]  ;;  %v3975_v46 = vld [vmem:[#allocation2 + $0xec] sm:$0xf] }
  0xa7   :  { %v2869_v40 = vor.u32 %v3965_v36, %v2868_v32  ;;  %v4445_v43 = vpack.c.bf16 %v192_v8, %v192_v8  ;;  %v4447_v44 = vpack.c.bf16 %v193_v9, %v193_v9  ;;  %v4029_v58 = vld [vmem:[#allocation2 + $0x294] sm:$0xf0]  ;;  %v3253_v1 = vor.u32 %v4061_v63, %v3252_v62  ;;  %v2964_v3 = vld [vmem:[#allocation2 + $0x148] sm:$0xf]  ;;  %v4039_v63 = vld [vmem:[#allocation2 + $0x2ec] sm:$0xf] }
  0xa8   :  { %1026 = vmatmul.bf16.vlgmr.msrb.gmra.mxu2 %v4437_v5  ;;  %1044 = vmatmul.bf16.vlgmr.msrb.gmra.mxu3 %v4439_v6  ;;  %v3125_v61 = vor.u32 %v4029_v58, %v3124_v57  ;;  %v3957_v2 = vld [vmem:[#allocation2 + $0x54] sm:$0xf0]  ;;  %v3108_v9 = vld [vmem:[#allocation2 + $0x268] sm:$0xf]  ;;  %v2902_v57 = vld [vmem:[#allocation2 + $0xd8] sm:$0xf0] }
  0xa9   :  { %v162_v16 = vpop.f32.mrf.mxu2  ;;  %v180_v17 = vpop.f32.mrf.mxu3  ;;  %1162 = vmatpush.bf16.msrb.mxu2 %v3173_v10  ;;  %1180 = vmatpush.bf16.msrb.mxu3 %v3301_v12  ;;  %v3989_v4 = vld [vmem:[#allocation2 + $0x154] sm:$0xf0]  ;;  %v2837_v7 = vor.u32 %v3957_v2, %v2836_v0  ;;  %v3076_v36 = vld [vmem:[#allocation2 + $0x228] sm:$0xf]  ;;  %v4003_v58 = vld [vmem:[#allocation2 + $0x1cc] sm:$0xf] }
  0xaa   :  { %v128_v24 = vpop.f32.mrf.mxu0  ;;  %v146_v25 = vpop.f32.mrf.mxu1  ;;  %v163_v33 = vadd.f32 %v162_v16, %v4415_v59  ;;  %v181_v34 = vadd.f32 %v180_v17, %v4423_v23  ;;  %1128 = vmatpush.bf16.msrb.mxu0 %v2885_v18  ;;  %1146 = vmatpush.bf16.msrb.mxu1 %v3013_v26  ;;  %v2997_v59 = vor.u32 %v3997_v39, %v2996_v20  ;;  %v4025_v10 = vld [vmem:[#allocation2 + $0x274] sm:$0xf0]  ;;  %v2948_v17 = vld [vmem:[#allocation2 + $0x128] sm:$0xf]  ;;  %v3174_v0 = vld [vmem:[#allocation2 + $0x2f8] sm:$0xf0] }
  0xab   :  { %v2965_v8 = vor.u32 %v3989_v4, %v2964_v3  ;;  %v3109_v12 = vor.u32 %v4025_v10, %v3108_v9  ;;  %v3953_v16 = vld [vmem:[#allocation2 + $0x34] sm:$0xf0]  ;;  %v2949_v24 = vor.u32 %v3985_v19, %v2948_v17  ;;  %v3093_v25 = vor.u32 %v4021_v22, %v3092_v21  ;;  %v3220_v26 = vld [vmem:[#allocation2 + $0x348] sm:$0xf]  ;;  %v3302_v3 = vld [vmem:[#allocation2 + $0x3f8] sm:$0xf0] }
  0xac   :  { %v194_v23 = vmax.f32 %v163_v33, 0.0  ;;  %v195_v48 = vmax.f32 %v181_v34, 0.0  ;;  %v2821_v18 = vor.u32 %v3953_v16, %v2820_v15  ;;  %v3949_v32 = vld [vmem:[#allocation2 + $0x14] sm:$0xf0]  ;;  %v2932_v33 = vld [vmem:[#allocation2 + $0x108] sm:$0xf]  ;;  %v3177_v2 = vor.u32 %v4039_v63, %v3174_v0 }
  0xad   :  { %1163 = vmatpush.bf16.msrb.mxu2 %v3157_v29  ;;  %1181 = vmatpush.bf16.msrb.mxu3 %v3285_v35  ;;  %v4053_v29 = vld [vmem:[#allocation2 + $0x354] sm:$0xf0]  ;;  %v2805_v35 = vor.u32 %v3949_v32, %v2804_v30  ;;  %v3204_v39 = vld [vmem:[#allocation2 + $0x328] sm:$0xf]  ;;  %v3999_v9 = vld [vmem:[#allocation2 + $0x1ac] sm:$0xf] }
  0xae   :  { %1129 = vmatpush.bf16.msrb.mxu0 %v2869_v40  ;;  %1147 = vmatpush.bf16.msrb.mxu1 %v2997_v59  ;;  %v4451_v27 = vpack.c.bf16 %v194_v23, %v194_v23  ;;  %v4453_v28 = vpack.c.bf16 %v195_v48, %v195_v48  ;;  %v3221_v31 = vor.u32 %v4053_v29, %v3220_v26  ;;  %v3981_v34 = vld [vmem:[#allocation2 + $0x114] sm:$0xf0]  ;;  %v2918_v59 = vld [vmem:[#allocation2 + $0xf8] sm:$0xf0]  ;;  %v4067_v16 = vld [vmem:[#allocation2 + $0x3cc] sm:$0xf] }
  0xaf   :  { %v4017_v20 = vld [vmem:[#allocation2 + $0x234] sm:$0xf0]  ;;  %v2933_v41 = vor.u32 %v3981_v34, %v2932_v33  ;;  %v2921_v23 = vor.u32 %v3975_v46, %v2918_v59  ;;  %v3046_v48 = vld [vmem:[#allocation2 + $0x1f8] sm:$0xf0]  ;;  %v3995_v22 = vld [vmem:[#allocation2 + $0x18c] sm:$0xf] }
  0xb0   :  { %v4049_v40 = vld [vmem:[#allocation2 + $0x334] sm:$0xf0]  ;;  %v3077_v42 = vor.u32 %v4017_v20, %v3076_v36  ;;  %v3286_v17 = vld [vmem:[#allocation2 + $0x3d8] sm:$0xf0]  ;;  %v4031_v26 = vld [vmem:[#allocation2 + $0x2ac] sm:$0xf] }
  0xb1   :  { %v164_v53 = vpop.f32.mrf.mxu2  ;;  %995 = vmatmul.bf16.gmra.mxu0 %v4445_v43  ;;  %1013 = vmatmul.bf16.gmra.mxu1 %v4447_v44  ;;  %v182_v54 = vpop.f32.mrf.mxu3  ;;  %v3205_v45 = vor.u32 %v4049_v40, %v3204_v39  ;;  %v4013_v50 = vld [vmem:[#allocation2 + $0x214] sm:$0xf0]  ;;  %v3289_v19 = vor.u32 %v4067_v16, %v3286_v17  ;;  %v2870_v21 = vld [vmem:[#allocation2 + $0x98] sm:$0xf0]  ;;  %v4063_v30 = vld [vmem:[#allocation2 + $0x3ac] sm:$0xf] }
  0xb2   :  { %1164 = vmatpush.bf16.msrb.mxu2 %v3141_v47  ;;  %1182 = vmatpush.bf16.msrb.mxu3 %v3269_v49  ;;  %v4007_v47 = vld [vmem:[#allocation2 + $0x1ec] sm:$0xf]  ;;  %v3060_v49 = vld [vmem:[#allocation2 + $0x208] sm:$0xf]  ;;  %v4045_v54 = vld [vmem:[#allocation2 + $0x314] sm:$0xf0] }
  0xb3   :  { %1130 = vmatpush.bf16.msrb.mxu0 %v2853_v55  ;;  %1148 = vmatpush.bf16.msrb.mxu1 %v2981_v60  ;;  %v3049_v51 = vor.u32 %v4007_v47, %v3046_v48  ;;  %v3061_v52 = vor.u32 %v4013_v50, %v3060_v49  ;;  %v3188_v53 = vld [vmem:[#allocation2 + $0x308] sm:$0xf]  ;;  %v3971_v55 = vld [vmem:[#allocation2 + $0xcc] sm:$0xf]  ;;  %v3030_v60 = vld [vmem:[#allocation2 + $0x1d8] sm:$0xf0] }
  0xb4   :  { %v3189_v56 = vor.u32 %v4045_v54, %v3188_v53  ;;  %v3033_v62 = vor.u32 %v4003_v58, %v3030_v60  ;;  %v3142_v29 = vld [vmem:[#allocation2 + $0x2b8] sm:$0xf0]  ;;  %v3991_v20 = vld [vmem:[#allocation2 + $0x16c] sm:$0xf] }
  0xb5   :  { %v3145_v33 = vor.u32 %v4031_v26, %v3142_v29  ;;  %v2854_v36 = vld [vmem:[#allocation2 + $0x78] sm:$0xf0]  ;;  %v4059_v59 = vld [vmem:[#allocation2 + $0x38c] sm:$0xf] }
  0xb6   :  { %1165 = vmatpush.bf16.msrb.mxu2 %v3125_v61  ;;  %1183 = vmatpush.bf16.msrb.mxu3 %v3253_v1  ;;  %v2905_v61 = vor.u32 %v3971_v55, %v2902_v57  ;;  %v4071_v1 = vld [vmem:[#allocation2 + $0x3ec] sm:$0xf]  ;;  %v2982_v40 = vld [vmem:[#allocation2 + $0x178] sm:$0xf0] }
  0xb7   :  { %1131 = vmatpush.bf16.msrb.mxu0 %v2837_v7  ;;  %1149 = vmatpush.bf16.msrb.mxu1 %v2965_v8  ;;  %v3305_v4 = vor.u32 %v4071_v1, %v3302_v3  ;;  %v3967_v7 = vld [vmem:[#allocation2 + $0xac] sm:$0xf]  ;;  %v2886_v8 = vld [vmem:[#allocation2 + $0xb8] sm:$0xf0] }
  0xb8   :  { %1031 = vmatmul.bf16.gmra.mxu2 %v4451_v27  ;;  %1049 = vmatmul.bf16.gmra.mxu3 %v4453_v28  ;;  %v2889_v10 = vor.u32 %v3967_v7, %v2886_v8  ;;  %v3254_v47 = vld [vmem:[#allocation2 + $0x398] sm:$0xf0]  ;;  %v3987_v50 = vld [vmem:[#allocation2 + $0x14c] sm:$0xf] }
  0xb9   :  { %v3257_v48 = vor.u32 %v4059_v59, %v3254_v47  ;;  %v2838_v49 = vld [vmem:[#allocation2 + $0x58] sm:$0xf0]  ;;  %v4023_v54 = vld [vmem:[#allocation2 + $0x26c] sm:$0xf]  ;;  %v3356_v47 = vld [vmem:[#allocation4 + $0x60] sm:$0xf] }
  0xba   :  { %1166 = vmatpush.bf16.msrb.mxu2 %v3109_v12  ;;  %1184 = vmatpush.bf16.msrb.mxu3 %v3237_v14  ;;  %v4035_v12 = vld [vmem:[#allocation2 + $0x2cc] sm:$0xf]  ;;  %v3017_v14 = vor.u32 %v3999_v9, %v3014_v11  ;;  %v3110_v55 = vld [vmem:[#allocation2 + $0x278] sm:$0xf0] }
  0xbb   :  { %1132 = vmatpush.bf16.msrb.mxu0 %v2821_v18  ;;  %1150 = vmatpush.bf16.msrb.mxu1 %v2949_v24  ;;  %v3161_v15 = vor.u32 %v4035_v12, %v3158_v13  ;;  %v3963_v18 = vld [vmem:[#allocation2 + $0x8c] sm:$0xf]  ;;  %v2998_v24 = vld [vmem:[#allocation2 + $0x198] sm:$0xf0]  ;;  %v3113_v57 = vor.u32 %v4023_v54, %v3110_v55  ;;  %v3548_v54 = vld [vmem:[#allocation4 + $0x1e0] sm:$0xf] }
  0xbc   :  { %v3001_v32 = vor.u32 %v3995_v22, %v2998_v24  ;;  %v3238_v58 = vld [vmem:[#allocation2 + $0x378] sm:$0xf0]  ;;  %v3983_v63 = vld [vmem:[#allocation2 + $0x12c] sm:$0xf]  ;;  %v4136_v55 = vld [vmem:[#allocation4 + $0x1ec] sm:$0xf0] }
  0xbd   :  { %v2950_v1 = vld [vmem:[#allocation2 + $0x138] sm:$0xf0]  ;;  %v4051_v8 = vld [vmem:[#allocation2 + $0x34c] sm:$0xf] }
  0xbe   :  { %1167 = vmatpush.bf16.msrb.mxu2 %v3093_v25  ;;  %1185 = vmatpush.bf16.msrb.mxu3 %v3221_v31  ;;  %v2873_v25 = vor.u32 %v3963_v18, %v2870_v21  ;;  %v3270_v31 = vld [vmem:[#allocation2 + $0x3b8] sm:$0xf0]  ;;  %v3979_v13 = vld [vmem:[#allocation2 + $0x10c] sm:$0xf] }
  0xbf   :  { %1133 = vmatpush.bf16.msrb.mxu0 %v2805_v35  ;;  %1151 = vmatpush.bf16.msrb.mxu1 %v2933_v41  ;;  %v3273_v34 = vor.u32 %v4063_v30, %v3270_v31  ;;  %v3959_v35 = vld [vmem:[#allocation2 + $0x6c] sm:$0xf]  ;;  %v3094_v3 = vld [vmem:[#allocation2 + $0x258] sm:$0xf0] }
  0xc0   :  { %v2857_v39 = vor.u32 %v3959_v35, %v2854_v36  ;;  %v4027_v41 = vld [vmem:[#allocation2 + $0x28c] sm:$0xf]  ;;  %v3222_v9 = vld [vmem:[#allocation2 + $0x358] sm:$0xf0]  ;;  %v3404_v36 = vld [vmem:[#allocation4 + $0xc0] sm:$0xf] }
  0xc1   :  { %1062 = vmatmul.bf16.vlgmr.msra.gmra.mxu0 %v4426_v37  ;;  %1080 = vmatmul.bf16.vlgmr.msra.gmra.mxu1 %v4428_v38  ;;  %v3225_v11 = vor.u32 %v4051_v8, %v3222_v9  ;;  %v2806_v12 = vld [vmem:[#allocation2 + $0x18] sm:$0xf0]  ;;  %v4015_v16 = vld [vmem:[#allocation2 + $0x22c] sm:$0xf]  ;;  %v3390_v8 = vld [vmem:[#allocation4 + $0xb0] sm:$0xf0] }
  0xc2   :  { %1168 = vmatpush.bf16.msrb.mxu2 %v3077_v42  ;;  %1186 = vmatpush.bf16.msrb.mxu3 %v3205_v45  ;;  %v3126_v42 = vld [vmem:[#allocation2 + $0x298] sm:$0xf0]  ;;  %v2985_v45 = vor.u32 %v3991_v20, %v2982_v40  ;;  %v4047_v18 = vld [vmem:[#allocation2 + $0x32c] sm:$0xf]  ;;  %v4100_v20 = vld [vmem:[#allocation4 + $0xcc] sm:$0xf0] }
  0xc3   :  { %1198 = vmatpush.bf16.msra.mxu0 %v2921_v23  ;;  %1216 = vmatpush.bf16.msra.mxu1 %v3049_v51  ;;  %v3129_v46 = vor.u32 %v4027_v41, %v3126_v42  ;;  %v3955_v23 = vld [vmem:[#allocation2 + $0x4c] sm:$0xf]  ;;  %v2966_v51 = vld [vmem:[#allocation2 + $0x158] sm:$0xf0]  ;;  %v3388_v40 = vld [vmem:[#allocation4 + $0xa0] sm:$0xf] }
  0xc4   :  { %v2969_v53 = vor.u32 %v3987_v50, %v2966_v51  ;;  %v3078_v17 = vld [vmem:[#allocation2 + $0x238] sm:$0xf0]  ;;  %v4043_v29 = vld [vmem:[#allocation2 + $0x30c] sm:$0xf]  ;;  %v4096_v41 = vld [vmem:[#allocation4 + $0xac] sm:$0xf0] }
  0xc5   :  { %v3081_v22 = vor.u32 %v4015_v16, %v3078_v17  ;;  %v3062_v26 = vld [vmem:[#allocation2 + $0x218] sm:$0xf0]  ;;  %v3389_v42 = vor.u32 %v4096_v41, %v3388_v40  ;;  %v3324_v50 = vld [vmem:[#allocation4 + $0x20] sm:$0xf]  ;;  %v4080_v51 = vld [vmem:[#allocation4 + $0x2c] sm:$0xf0] }
  0xc6   :  { %1169 = vmatpush.bf16.msrb.mxu2 %v3061_v52  ;;  %1187 = vmatpush.bf16.msrb.mxu3 %v3189_v56  ;;  %v2841_v52 = vor.u32 %v3955_v23, %v2838_v49  ;;  %v4055_v56 = vld [vmem:[#allocation2 + $0x36c] sm:$0xf]  ;;  %v3190_v31 = vld [vmem:[#allocation2 + $0x318] sm:$0xf0]  ;;  %v4088_v23 = vld [vmem:[#allocation4 + $0x6c] sm:$0xf0] }
  0xc7   :  { %1199 = vmatpush.bf16.msra.mxu0 %v2905_v61  ;;  %1217 = vmatpush.bf16.msra.mxu1 %v3033_v62  ;;  %v3241_v60 = vor.u32 %v4055_v56, %v3238_v58  ;;  %v3951_v61 = vld [vmem:[#allocation2 + $0x2c] sm:$0xf]  ;;  %v2822_v62 = vld [vmem:[#allocation2 + $0x38] sm:$0xf0]  ;;  %v4084_v49 = vld [vmem:[#allocation4 + $0x4c] sm:$0xf0] }
  0xc8   :  { %1098 = vmatmul.bf16.vlgmr.msra.gmra.mxu2 %v4437_v5  ;;  %1116 = vmatmul.bf16.vlgmr.msra.gmra.mxu3 %v4439_v6  ;;  %v2825_v0 = vor.u32 %v3951_v61, %v2822_v62  ;;  %v4102_v56 = vld [vmem:[#allocation4 + $0xe4] sm:$0xf]  ;;  %v3532_v61 = vld [vmem:[#allocation4 + $0x1c0] sm:$0xf]  ;;  %v4132_v62 = vld [vmem:[#allocation4 + $0x1cc] sm:$0xf0] }
  0xc9   :  { %v3374_v17 = vld [vmem:[#allocation4 + $0x90] sm:$0xf0] }
  0xca   :  { %1234 = vmatpush.bf16.msra.mxu2 %v3177_v2  ;;  %1252 = vmatpush.bf16.msra.mxu3 %v3305_v4  ;;  %v4019_v2 = vld [vmem:[#allocation2 + $0x24c] sm:$0xf]  ;;  %v2953_v4 = vor.u32 %v3983_v63, %v2950_v1  ;;  %v3533_v63 = vor.u32 %v4132_v62, %v3532_v61  ;;  %v3406_v1 = vld [vmem:[#allocation4 + $0xd0] sm:$0xf0] }
  0xcb   :  { %1200 = vmatpush.bf16.msra.mxu0 %v2889_v10  ;;  %1218 = vmatpush.bf16.msra.mxu1 %v3017_v14  ;;  %v3097_v7 = vor.u32 %v4019_v2, %v3094_v3  ;;  %v3947_v10 = vld [vmem:[#allocation2 + $0xc] sm:$0xf]  ;;  %v2934_v14 = vld [vmem:[#allocation2 + $0x118] sm:$0xf0]  ;;  %v4128_v3 = vld [vmem:[#allocation4 + $0x1ac] sm:$0xf0] }
  0xcc   :  { %v2937_v21 = vor.u32 %v3979_v13, %v2934_v14  ;;  %v3500_v13 = vld [vmem:[#allocation4 + $0x180] sm:$0xf]  ;;  %v4124_v14 = vld [vmem:[#allocation4 + $0x18c] sm:$0xf0]  ;;  %v3342_v41 = vld [vmem:[#allocation4 + $0x50] sm:$0xf0] }
  0xcd   :  { %v3501_v16 = vor.u32 %v4124_v14, %v3500_v13 }
  0xce   :  { %1235 = vmatpush.bf16.msra.mxu2 %v3161_v15  ;;  %1253 = vmatpush.bf16.msra.mxu3 %v3289_v19  ;;  %v2809_v15 = vor.u32 %v3947_v10, %v2806_v12  ;;  %v3206_v19 = vld [vmem:[#allocation2 + $0x338] sm:$0xf0] }
  0xcf   :  { %1201 = vmatpush.bf16.msra.mxu0 %v2873_v25  ;;  %1219 = vmatpush.bf16.msra.mxu1 %v3001_v32  ;;  %v3209_v24 = vor.u32 %v4047_v18, %v3206_v19  ;;  %v4011_v25 = vld [vmem:[#allocation2 + $0x20c] sm:$0xf]  ;;  %v3193_v32 = vor.u32 %v4043_v29, %v3190_v31 }
  0xd0   :  { %v3065_v30 = vor.u32 %v4011_v25, %v3062_v26 }
  0xd1   :  { %1067 = vmatmul.bf16.gmra.mxu0 %v4445_v43  ;;  %1085 = vmatmul.bf16.gmra.mxu1 %v4447_v44 }
  0xd2   :  { %1236 = vmatpush.bf16.msra.mxu2 %v3145_v33  ;;  %1254 = vmatpush.bf16.msra.mxu3 %v3273_v34  ;;  %v3420_v33 = vld [vmem:[#allocation4 + $0xe0] sm:$0xf]  ;;  %v4104_v34 = vld [vmem:[#allocation4 + $0xec] sm:$0xf0] }
  0xd3   :  { %1202 = vmatpush.bf16.msra.mxu0 %v2857_v39  ;;  %1220 = vmatpush.bf16.msra.mxu1 %v2985_v45  ;;  %v3421_v35 = vor.u32 %v4104_v34, %v3420_v33  ;;  %v3405_v39 = vor.u32 %v4100_v20, %v3404_v36  ;;  %v3372_v45 = vld [vmem:[#allocation4 + $0x80] sm:$0xf]  ;;  %v4116_v20 = vld [vmem:[#allocation4 + $0x14c] sm:$0xf0] }
  0xd4   :  { %v3468_v36 = vld [vmem:[#allocation4 + $0x140] sm:$0xf] }
  0xd5   :  { %v3469_v40 = vor.u32 %v4116_v20, %v3468_v36  ;;  %v3396_v36 = vld [vmem:[#allocation4 + $0xa8] sm:$0xf]  ;;  %v4097_v20 = vld [vmem:[#allocation4 + $0xb4] sm:$0xf0] }
  0xd6   :  { %1237 = vmatpush.bf16.msra.mxu2 %v3129_v46  ;;  %1255 = vmatpush.bf16.msra.mxu3 %v3257_v48  ;;  %v4092_v46 = vld [vmem:[#allocation4 + $0x8c] sm:$0xf0]  ;;  %v3357_v48 = vor.u32 %v4088_v23, %v3356_v47  ;;  %v4078_v23 = vld [vmem:[#allocation4 + $0x24] sm:$0xf] }
  0xd7   :  { %1203 = vmatpush.bf16.msra.mxu0 %v2841_v52  ;;  %1221 = vmatpush.bf16.msra.mxu1 %v2969_v53  ;;  %v3373_v59 = vor.u32 %v4092_v46, %v3372_v45  ;;  %v3325_v52 = vor.u32 %v4080_v51, %v3324_v50  ;;  %v4076_v53 = vld [vmem:[#allocation4 + $0xc] sm:$0xf0] }
  0xd8   :  { %1103 = vmatmul.bf16.gmra.mxu2 %v4451_v27  ;;  %1121 = vmatmul.bf16.gmra.mxu3 %v4453_v28  ;;  %v4112_v47 = vld [vmem:[#allocation4 + $0x12c] sm:$0xf0] }
  0xda   :  { %1238 = vmatpush.bf16.msra.mxu2 %v3113_v57  ;;  %1256 = vmatpush.bf16.msra.mxu3 %v3241_v60  ;;  %v3549_v57 = vor.u32 %v4136_v55, %v3548_v54  ;;  %v3436_v55 = vld [vmem:[#allocation4 + $0x100] sm:$0xf] }
  0xdb   :  { %1204 = vmatpush.bf16.msra.mxu0 %v2825_v0  ;;  %1222 = vmatpush.bf16.msra.mxu1 %v2953_v4  ;;  %v4098_v0 = vld [vmem:[#allocation4 + $0xc4] sm:$0xf] }
  0xdc   :  { %v3409_v2 = vor.u32 %v4098_v0, %v3406_v1  ;;  %v4094_v4 = vld [vmem:[#allocation4 + $0xa4] sm:$0xf]  ;;  %v3676_v0 = vld [vmem:[#allocation4 + $0x2e0] sm:$0xf]  ;;  %v4168_v1 = vld [vmem:[#allocation4 + $0x2ec] sm:$0xf0] }
  0xdd   :  { %v3393_v9 = vor.u32 %v4094_v4, %v3390_v8  ;;  %v3677_v4 = vor.u32 %v4168_v1, %v3676_v0  ;;  %v3428_v8 = vld [vmem:[#allocation4 + $0xe8] sm:$0xf] }
  0xde   :  { %1239 = vmatpush.bf16.msra.mxu2 %v3097_v7  ;;  %1257 = vmatpush.bf16.msra.mxu3 %v3225_v11 }
  0xdf   :  { %1205 = vmatpush.bf16.msra.mxu0 %v2809_v15  ;;  %1223 = vmatpush.bf16.msra.mxu1 %v2937_v21  ;;  %v4090_v15 = vld [vmem:[#allocation4 + $0x84] sm:$0xf]  ;;  %v3484_v21 = vld [vmem:[#allocation4 + $0x160] sm:$0xf] }
  0xe0   :  { %v3377_v18 = vor.u32 %v4090_v15, %v3374_v17  ;;  %v3660_v15 = vld [vmem:[#allocation4 + $0x2c0] sm:$0xf] }
  0xe1   :  { %1134 = vmatmul.bf16.vlgmr.msrb.gmra.mxu0 %v4426_v37  ;;  %1152 = vmatmul.bf16.vlgmr.msrb.gmra.mxu1 %v4428_v38 }
  0xe2   :  { %1240 = vmatpush.bf16.msra.mxu2 %v3081_v22  ;;  %1258 = vmatpush.bf16.msra.mxu3 %v3209_v24  ;;  %v4120_v22 = vld [vmem:[#allocation4 + $0x16c] sm:$0xf0]  ;;  %v4086_v24 = vld [vmem:[#allocation4 + $0x64] sm:$0xf] }
  0xe3   :  { %2068 = vmatpush.bf16.msrb.mxu0 %v3421_v35  ;;  %2086 = vmatpush.bf16.msrb.mxu1 %v3549_v57  ;;  %v3485_v29 = vor.u32 %v4120_v22, %v3484_v21  ;;  %v4074_v57 = vld [vmem:[#allocation4 + $0x4] sm:$0xf]  ;;  %v3412_v21 = vld [vmem:[#allocation4 + $0xc8] sm:$0xf] }
  0xe6   :  { %1241 = vmatpush.bf16.msra.mxu2 %v3065_v30  ;;  %1259 = vmatpush.bf16.msra.mxu3 %v3193_v32  ;;  %v3358_v30 = vld [vmem:[#allocation4 + $0x70] sm:$0xf0] }
  0xe7   :  { %2069 = vmatpush.bf16.msrb.mxu0 %v3405_v39  ;;  %2087 = vmatpush.bf16.msrb.mxu1 %v3533_v63  ;;  %v3361_v31 = vor.u32 %v4086_v24, %v3358_v30  ;;  %v4082_v39 = vld [vmem:[#allocation4 + $0x44] sm:$0xf]  ;;  %v4101_v24 = vld [vmem:[#allocation4 + $0xd4] sm:$0xf0]  ;;  %v4160_v30 = vld [vmem:[#allocation4 + $0x2ac] sm:$0xf0] }
  0xe8   :  { %1170 = vmatmul.bf16.vlgmr.msrb.gmra.mxu2 %v4437_v5  ;;  %1188 = vmatmul.bf16.vlgmr.msrb.gmra.mxu3 %v4439_v6  ;;  %v3345_v45 = vor.u32 %v4082_v39, %v3342_v41 }
  0xea   :  { %2104 = vmatpush.bf16.msrb.mxu2 %v3677_v4  ;;  %v4114_v4 = vld [vmem:[#allocation4 + $0x144] sm:$0xf] }
  0xeb   :  { %2070 = vmatpush.bf16.msrb.mxu0 %v3389_v42 }
  0xef   :  { %2071 = vmatpush.bf16.msrb.mxu0 %v3373_v59  ;;  %v3452_v59 = vld [vmem:[#allocation4 + $0x120] sm:$0xf] }
  0xf1   :  { %1139 = vmatmul.bf16.gmra.mxu0 %v4445_v43  ;;  %1157 = vmatmul.bf16.gmra.mxu1 %v4447_v44 }
  0xf3   :  { %2072 = vmatpush.bf16.msrb.mxu0 %v3357_v48 }
  0xf8   :  { %1175 = vmatmul.bf16.gmra.mxu2 %v4451_v27  ;;  %1193 = vmatmul.bf16.gmra.mxu3 %v4453_v28 }
 0x101   :  { %1206 = vmatmul.bf16.vlgmr.msra.gmra.mxu0 %v4426_v37  ;;  %1224 = vmatmul.bf16.vlgmr.msra.gmra.mxu1 %v4428_v38  ;;  %v3340_v37 = vld [vmem:[#allocation4 + $0x40] sm:$0xf] }
 0x102   :  { %v3341_v38 = vor.u32 %v4084_v49, %v3340_v37  ;;  %v3453_v49 = vor.u32 %v4112_v47, %v3452_v59  ;;  %v3628_v59 = vld [vmem:[#allocation4 + $0x280] sm:$0xf]  ;;  %v4156_v47 = vld [vmem:[#allocation4 + $0x28c] sm:$0xf0] }
 0x104   :  { %2073 = vmatpush.bf16.msrb.mxu0 %v3341_v38  ;;  %v3326_v38 = vld [vmem:[#allocation4 + $0x30] sm:$0xf0] }
 0x108   :  { %1242 = vmatmul.bf16.vlgmr.msra.gmra.mxu2 %v4437_v5  ;;  %1260 = vmatmul.bf16.vlgmr.msra.gmra.mxu3 %v4439_v6  ;;  %v3308_v5 = vld [vmem:[#allocation4] sm:$0xf] }
 0x109   :  { %2074 = vmatpush.bf16.msrb.mxu0 %v3325_v52  ;;  %v3309_v6 = vor.u32 %v4076_v53, %v3308_v5  ;;  %v3329_v52 = vor.u32 %v4078_v23, %v3326_v38  ;;  %v4122_v23 = vld [vmem:[#allocation4 + $0x184] sm:$0xf]  ;;  %v4093_v38 = vld [vmem:[#allocation4 + $0x94] sm:$0xf0] }
 0x10d   :  { %2075 = vmatpush.bf16.msrb.mxu0 %v3309_v6 }
 0x111   :  { %1211 = vmatmul.bf16.gmra.mxu0 %v4445_v43  ;;  %1229 = vmatmul.bf16.gmra.mxu1 %v4447_v44  ;;  %v3422_v43 = vld [vmem:[#allocation4 + $0xf0] sm:$0xf0] }
 0x112   :  { %v3425_v58 = vor.u32 %v4102_v56, %v3422_v43  ;;  %v4108_v56 = vld [vmem:[#allocation4 + $0x10c] sm:$0xf0] }
 0x113   :  { %v3437_v43 = vor.u32 %v4108_v56, %v3436_v55 }
 0x114   :  { %2140 = vmatpush.bf16.msra.mxu0 %v3425_v58  ;;  %v3310_v58 = vld [vmem:[#allocation4 + $0x10] sm:$0xf0] }
 0x115   :  { %v3313_v61 = vor.u32 %v4074_v57, %v3310_v58  ;;  %v3364_v58 = vld [vmem:[#allocation4 + $0x68] sm:$0xf] }
 0x118   :  { %1247 = vmatmul.bf16.gmra.mxu2 %v4451_v27  ;;  %1265 = vmatmul.bf16.gmra.mxu3 %v4453_v28  ;;  %v4484_v27 = vld [vmem:[%s4710_s4] sm:$0xf] }
 0x119   :  { %2141 = vmatpush.bf16.msra.mxu0 %v3409_v2  ;;  %v3516_v28 = vld [vmem:[#allocation4 + $0x1a0] sm:$0xf]  ;;  %v334_v10 = vperm.slane %v4484_v27, 0  ;;  %v4134_v2 = vld [vmem:[#allocation4 + $0x1e4] sm:$0xf] }
 0x11a   :  { %v3517_v7 = vor.u32 %v4128_v3, %v3516_v28 }
 0x11c   :  { %2088 = vmatpush.bf16.msrb.mxu1 %v3517_v7  ;;  %v3550_v7 = vld [vmem:[#allocation4 + $0x1f0] sm:$0xf0] }
 0x11d   :  { %2142 = vmatpush.bf16.msra.mxu0 %v3393_v9  ;;  %v4105_v9 = vld [vmem:[#allocation4 + $0xf4] sm:$0xf0] }
 0x11e   :  { %v991_v44 = vpop.f32.mrf.mxu0  ;;  %v1009_v60 = vpop.f32.mrf.mxu1 }
 0x11f   :  { %v992_v19 = vadd.f32 %v991_v44, %v334_v10 }
 0x120   :  { %2089 = vmatpush.bf16.msrb.mxu1 %v3501_v16  ;;  %v4164_v16 = vld [vmem:[#allocation4 + $0x2cc] sm:$0xf0] }
 0x121   :  { %2143 = vmatpush.bf16.msra.mxu0 %v3377_v18  ;;  %v1010_v32 = vadd.f32 %v1009_v60, %v992_v19  ;;  %v3661_v17 = vor.u32 %v4164_v16, %v3660_v15  ;;  %v4130_v18 = vld [vmem:[#allocation4 + $0x1c4] sm:$0xf]  ;;  %v3534_v19 = vld [vmem:[#allocation4 + $0x1d0] sm:$0xf0]  ;;  %v4144_v16 = vld [vmem:[#allocation4 + $0x22c] sm:$0xf0] }
 0x122   :  { %v3537_v22 = vor.u32 %v4130_v18, %v3534_v19 }
 0x123   :  { %2105 = vmatpush.bf16.msrb.mxu2 %v3661_v17  ;;  %v4110_v17 = vld [vmem:[#allocation4 + $0x124] sm:$0xf] }
 0x124   :  { %2090 = vmatpush.bf16.msrb.mxu1 %v3485_v29  ;;  %v3644_v29 = vld [vmem:[#allocation4 + $0x2a0] sm:$0xf] }
 0x125   :  { %2144 = vmatpush.bf16.msra.mxu0 %v3361_v31  ;;  %v4126_v31 = vld [vmem:[#allocation4 + $0x1a4] sm:$0xf] }
 0x126   :  { %v993_v11 = vpop.f32.mrf.mxu0  ;;  %v1011_v12 = vpop.f32.mrf.mxu1 }
 0x127   :  { %v994_v33 = vadd.f32 %v993_v11, %v334_v10  ;;  %v3429_v11 = vor.u32 %v4105_v9, %v3428_v8  ;;  %v3470_v8 = vld [vmem:[#allocation4 + $0x150] sm:$0xf0]  ;;  %v3348_v9 = vld [vmem:[#allocation4 + $0x48] sm:$0xf] }
 0x128   :  { %2091 = vmatpush.bf16.msrb.mxu1 %v3469_v40  ;;  %v3397_v40 = vor.u32 %v4097_v20, %v3396_v36  ;;  %v4140_v36 = vld [vmem:[#allocation4 + $0x20c] sm:$0xf0]  ;;  %v4106_v20 = vld [vmem:[#allocation4 + $0x104] sm:$0xf] }
 0x129   :  { %v1012_v46 = vadd.f32 %v1011_v12, %v994_v33  ;;  %2145 = vmatpush.bf16.msra.mxu0 %v3345_v45 }
 0x12b   :  { %v1027_v25 = vpop.f32.mrf.mxu2  ;;  %v1045_v26 = vpop.f32.mrf.mxu3 }
 0x12c   :  { %v1028_v42 = vadd.f32 %v1027_v25, %v1010_v32  ;;  %2092 = vmatpush.bf16.msrb.mxu1 %v3453_v49  ;;  %v3380_v49 = vld [vmem:[#allocation4 + $0x88] sm:$0xf] }
 0x12d   :  { %2146 = vmatpush.bf16.msra.mxu0 %v3329_v52 }
 0x12e   :  { %v996_v34 = vpop.f32.mrf.mxu0  ;;  %v1014_v35 = vpop.f32.mrf.mxu1  ;;  %v1046_v50 = vadd.f32 %v1045_v26, %v1028_v42  ;;  %v3413_v26 = vor.u32 %v4101_v24, %v3412_v21  ;;  %v4491_v42 = vperm.slane %v4484_v27, 1  ;;  %v3332_v24 = vld [vmem:[#allocation4 + $0x28] sm:$0xf] }
 0x12f   :  { %v997_v5 = vadd.f32 %v996_v34, %v334_v10  ;;  %v3553_v10 = vor.u32 %v4134_v2, %v3550_v7  ;;  %v3645_v34 = vor.u32 %v4160_v30, %v3644_v29 }
 0x130   :  { %v1270_v44 = vmax.f32 %v1046_v50, 0.0  ;;  %2093 = vmatpush.bf16.msrb.mxu1 %v3437_v43  ;;  %v3486_v43 = vld [vmem:[#allocation4 + $0x170] sm:$0xf0] }
 0x131   :  { %v1015_v62 = vadd.f32 %v1014_v35, %v997_v5  ;;  %2147 = vmatpush.bf16.msra.mxu0 %v3313_v61  ;;  %v3518_v35 = vld [vmem:[#allocation4 + $0x1b0] sm:$0xf0]  ;;  %2106 = vmatpush.bf16.msrb.mxu2 %v3645_v34 }
 0x132   :  { %v3521_v39 = vor.u32 %v4126_v31, %v3518_v35  ;;  %v3564_v35 = vld [vmem:[#allocation4 + $0x200] sm:$0xf] }
 0x133   :  { %v1029_v48 = vpop.f32.mrf.mxu2  ;;  %v1047_v37 = vpop.f32.mrf.mxu3 }
 0x134   :  { %v1030_v51 = vadd.f32 %v1029_v48, %v1012_v46  ;;  %2158 = vmatpush.bf16.msra.mxu1 %v3553_v10  ;;  %v3629_v48 = vor.u32 %v4156_v47, %v3628_v59  ;;  %v4085_v10 = vld [vmem:[#allocation4 + $0x54] sm:$0xf0] }
 0x136   :  { %v1048_v53 = vadd.f32 %v1047_v37, %v1030_v51  ;;  %v998_v6 = vpop.f32.mrf.mxu0  ;;  %v1016_v54 = vpop.f32.mrf.mxu1  ;;  %v3502_v37 = vld [vmem:[#allocation4 + $0x190] sm:$0xf0]  ;;  %v3381_v51 = vor.u32 %v4093_v38, %v3380_v49  ;;  %2107 = vmatpush.bf16.msrb.mxu2 %v3629_v48  ;;  %v3804_v49 = vld [vmem:[#allocation4 + $0x3e0] sm:$0xf]  ;;  %v4200_v38 = vld [vmem:[#allocation4 + $0x3ec] sm:$0xf0] }
 0x137   :  { %v3505_v50 = vor.u32 %v4122_v23, %v3502_v37  ;;  %v4152_v6 = vld [vmem:[#allocation4 + $0x26c] sm:$0xf0]  ;;  %v4118_v54 = vld [vmem:[#allocation4 + $0x164] sm:$0xf] }
 0x138   :  { %v1274_v60 = vmax.f32 %v1048_v53, 0.0  ;;  %2159 = vmatpush.bf16.msra.mxu1 %v3537_v22  ;;  %v3612_v53 = vld [vmem:[#allocation4 + $0x260] sm:$0xf]  ;;  %v3454_v22 = vld [vmem:[#allocation4 + $0x130] sm:$0xf0] }
 0x139   :  { %v3613_v57 = vor.u32 %v4152_v6, %v3612_v53  ;;  %v3457_v30 = vor.u32 %v4110_v17, %v3454_v22  ;;  %v3678_v53 = vld [vmem:[#allocation4 + $0x2f0] sm:$0xf0]  ;;  %v3556_v6 = vld [vmem:[#allocation4 + $0x1e8] sm:$0xf]  ;;  %v4192_v17 = vld [vmem:[#allocation4 + $0x3ac] sm:$0xf0] }
 0x13a   :  { %v4487_v63 = vpack.c.bf16 %v1274_v60, %v1270_v44  ;;  %v4089_v44 = vld [vmem:[#allocation4 + $0x74] sm:$0xf0]  ;;  %v3489_v60 = vor.u32 %v4118_v54, %v3486_v43  ;;  %v3430_v43 = vld [vmem:[#allocation4 + $0xf8] sm:$0xf0]  ;;  %v3524_v22 = vld [vmem:[#allocation4 + $0x1a8] sm:$0xf] }
 0x13b   :  { %v1032_v28 = vpop.f32.mrf.mxu2  ;;  %v1050_v3 = vpop.f32.mrf.mxu3  ;;  %v3365_v61 = vor.u32 %v4089_v44, %v3364_v58  ;;  %2108 = vmatpush.bf16.msrb.mxu2 %v3613_v57  ;;  %v4103_v57 = vld [vmem:[#allocation4 + $0xec] sm:$0xf] }
 0x13c   :  { %2076 = vmatmul.bf16.vlgmr.msrb.gmra.mxu0 %v4487_v63  ;;  %v1033_v12 = vadd.f32 %v1032_v28, %v1015_v62  ;;  %2160 = vmatpush.bf16.msra.mxu1 %v3521_v39  ;;  %v3596_v28 = vld [vmem:[#allocation4 + $0x240] sm:$0xf]  ;;  %v3433_v44 = vor.u32 %v4103_v57, %v3430_v43  ;;  %v4121_v57 = vld [vmem:[#allocation4 + $0x174] sm:$0xf0] }
 0x13d   :  { %2212 = vmatpush.bf16.msrb.mxu0 %v3429_v11 }
 0x13e   :  { %v1063_v13 = vpop.f32.mrf.mxu0  ;;  %v1081_v14 = vpop.f32.mrf.mxu1  ;;  %v1051_v25 = vadd.f32 %v1050_v3, %v1033_v12  ;;  %v4148_v3 = vld [vmem:[#allocation4 + $0x24c] sm:$0xf0]  ;;  %v3473_v12 = vor.u32 %v4114_v4, %v3470_v8  ;;  %v4133_v8 = vld [vmem:[#allocation4 + $0x1d4] sm:$0xf0] }
 0x13f   :  { %v1064_v5 = vadd.f32 %v1063_v13, %v4491_v42  ;;  %v3597_v7 = vor.u32 %v4148_v3, %v3596_v28  ;;  %v3349_v13 = vor.u32 %v4085_v10, %v3348_v9  ;;  %v4162_v28 = vld [vmem:[#allocation4 + $0x2c4] sm:$0xf]  ;;  %v3662_v3 = vld [vmem:[#allocation4 + $0x2d0] sm:$0xf0]  ;;  %v4099_v9 = vld [vmem:[#allocation4 + $0xcc] sm:$0xf] }
 0x140   :  { %v1278_v41 = vmax.f32 %v1051_v25, 0.0  ;;  %2161 = vmatpush.bf16.msra.mxu1 %v3505_v50  ;;  %v4081_v25 = vld [vmem:[#allocation4 + $0x34] sm:$0xf0]  ;;  %v3665_v4 = vor.u32 %v4162_v28, %v3662_v3  ;;  %v3724_v3 = vld [vmem:[#allocation4 + $0x340] sm:$0xf] }
 0x141   :  { %2213 = vmatpush.bf16.msrb.mxu0 %v3413_v26  ;;  %v1082_v62 = vadd.f32 %v1081_v14, %v1064_v5  ;;  %2109 = vmatpush.bf16.msrb.mxu2 %v3597_v7  ;;  %v3580_v14 = vld [vmem:[#allocation4 + $0x220] sm:$0xf]  ;;  %v3333_v31 = vor.u32 %v4081_v25, %v3332_v24  ;;  %v3805_v5 = vor.u32 %v4200_v38, %v3804_v49  ;;  %v3540_v7 = vld [vmem:[#allocation4 + $0x1c8] sm:$0xf]  ;;  %v4129_v24 = vld [vmem:[#allocation4 + $0x1b4] sm:$0xf0] }
 0x142   :  { %v4493_v52 = vpack.c.bf16 %v1278_v41, %v1278_v41  ;;  %v3581_v21 = vor.u32 %v4144_v16, %v3580_v14  ;;  %v3438_v41 = vld [vmem:[#allocation4 + $0x110] sm:$0xf0]  ;;  %v3772_v16 = vld [vmem:[#allocation4 + $0x3a0] sm:$0xf] }
 0x143   :  { %v1034_v32 = vpop.f32.mrf.mxu2  ;;  %v1052_v33 = vpop.f32.mrf.mxu3  ;;  %v3441_v23 = vor.u32 %v4106_v20, %v3438_v41  ;;  %2122 = vmatpush.bf16.msrb.mxu3 %v3805_v5  ;;  %v4188_v20 = vld [vmem:[#allocation4 + $0x38c] sm:$0xf0]  ;;  %v3630_v41 = vld [vmem:[#allocation4 + $0x290] sm:$0xf0] }
 0x144   :  { %2162 = vmatpush.bf16.msra.mxu1 %v3489_v60 }
 0x145   :  { %2214 = vmatpush.bf16.msrb.mxu0 %v3397_v40  ;;  %2110 = vmatpush.bf16.msrb.mxu2 %v3581_v21  ;;  %v3565_v40 = vor.u32 %v4140_v36, %v3564_v35  ;;  %v3646_v21 = vld [vmem:[#allocation4 + $0x2b0] sm:$0xf0]  ;;  %v3756_v36 = vld [vmem:[#allocation4 + $0x380] sm:$0xf] }
 0x146   :  { %v1065_v45 = vpop.f32.mrf.mxu0  ;;  %v1083_v46 = vpop.f32.mrf.mxu1 }
 0x147   :  { %v1066_v0 = vadd.f32 %v1065_v45, %v4491_v42  ;;  %v3316_v45 = vld [vmem:[#allocation4 + $0x8] sm:$0xf] }
 0x148   :  { %2163 = vmatpush.bf16.msra.mxu1 %v3473_v12  ;;  %v3414_v12 = vld [vmem:[#allocation4 + $0xd8] sm:$0xf0] }
 0x149   :  { %2215 = vmatpush.bf16.msrb.mxu0 %v3381_v51  ;;  %v1084_v15 = vadd.f32 %v1083_v46, %v1066_v0  ;;  %v4077_v46 = vld [vmem:[#allocation4 + $0x14] sm:$0xf0]  ;;  %2111 = vmatpush.bf16.msrb.mxu2 %v3565_v40  ;;  %v3788_v0 = vld [vmem:[#allocation4 + $0x3c0] sm:$0xf]  ;;  %v3417_v14 = vor.u32 %v4099_v9, %v3414_v12  ;;  %v3757_v40 = vor.u32 %v4188_v20, %v3756_v36  ;;  %v3334_v20 = vld [vmem:[#allocation4 + $0x38] sm:$0xf0] }
 0x14a   :  { %v3317_v48 = vor.u32 %v4077_v46, %v3316_v45  ;;  %v3508_v45 = vld [vmem:[#allocation4 + $0x188] sm:$0xf]  ;;  %v4125_v46 = vld [vmem:[#allocation4 + $0x194] sm:$0xf0] }
 0x14b   :  { %v1099_v55 = vpop.f32.mrf.mxu2  ;;  %v1117_v56 = vpop.f32.mrf.mxu3 }
 0x14c   :  { %2081 = vmatmul.bf16.gmra.mxu0 %v4493_v52  ;;  %v1100_v11 = vadd.f32 %v1099_v55, %v1082_v62  ;;  %2164 = vmatpush.bf16.msra.mxu1 %v3457_v30  ;;  %v3398_v30 = vld [vmem:[#allocation4 + $0xb8] sm:$0xf0] }
 0x14d   :  { %2216 = vmatpush.bf16.msrb.mxu0 %v3365_v61 }
 0x14e   :  { %v1068_v1 = vpop.f32.mrf.mxu0  ;;  %v1086_v2 = vpop.f32.mrf.mxu1  ;;  %v1118_v26 = vadd.f32 %v1117_v56, %v1100_v11  ;;  %v4137_v56 = vld [vmem:[#allocation4 + $0x1f4] sm:$0xf0]  ;;  %v3541_v11 = vor.u32 %v4133_v8, %v3540_v7  ;;  %v4146_v7 = vld [vmem:[#allocation4 + $0x244] sm:$0xf] }
 0x14f   :  { %v1069_v39 = vadd.f32 %v1068_v1, %v4491_v42  ;;  %v4166_v42 = vld [vmem:[#allocation4 + $0x2e4] sm:$0xf]  ;;  %v3557_v58 = vor.u32 %v4137_v56, %v3556_v6  ;;  %v4196_v1 = vld [vmem:[#allocation4 + $0x3cc] sm:$0xf0]  ;;  %v3492_v56 = vld [vmem:[#allocation4 + $0x168] sm:$0xf] }
 0x150   :  { %v1271_v59 = vmax.f32 %v1118_v26, 0.0  ;;  %2165 = vmatpush.bf16.msra.mxu1 %v3441_v23  ;;  %v3681_v55 = vor.u32 %v4166_v42, %v3678_v53  ;;  %v3525_v26 = vor.u32 %v4129_v24, %v3524_v22  ;;  %v4091_v23 = vld [vmem:[#allocation4 + $0x8c] sm:$0xf]  ;;  %v3740_v42 = vld [vmem:[#allocation4 + $0x360] sm:$0xf] }
 0x151   :  { %2217 = vmatpush.bf16.msrb.mxu0 %v3349_v13  ;;  %v1087_v54 = vadd.f32 %v1086_v2, %v1069_v39  ;;  %v3789_v2 = vor.u32 %v4196_v1, %v3788_v0  ;;  %v4154_v39 = vld [vmem:[#allocation4 + $0x284] sm:$0xf]  ;;  %v4184_v53 = vld [vmem:[#allocation4 + $0x36c] sm:$0xf0] }
 0x152   :  { %2176 = vmatpush.bf16.msra.mxu2 %v3681_v55  ;;  %v4150_v6 = vld [vmem:[#allocation4 + $0x264] sm:$0xf]  ;;  %v3614_v55 = vld [vmem:[#allocation4 + $0x270] sm:$0xf0]  ;;  %v4176_v22 = vld [vmem:[#allocation4 + $0x32c] sm:$0xf0] }
 0x153   :  { %v1101_v18 = vpop.f32.mrf.mxu2  ;;  %v1119_v19 = vpop.f32.mrf.mxu3  ;;  %2123 = vmatpush.bf16.msrb.mxu3 %v3789_v2  ;;  %v3617_v43 = vor.u32 %v4150_v6, %v3614_v55  ;;  %v4142_v24 = vld [vmem:[#allocation4 + $0x224] sm:$0xf]  ;;  %v4075_v6 = vld [vmem:[#allocation4 + $0xc] sm:$0xf] }
 0x154   :  { %v1102_v29 = vadd.f32 %v1101_v18, %v1084_v15  ;;  %v4158_v18 = vld [vmem:[#allocation4 + $0x2a4] sm:$0xf] }
 0x155   :  { %2218 = vmatpush.bf16.msrb.mxu0 %v3333_v31  ;;  %v3649_v25 = vor.u32 %v4158_v18, %v3646_v21  ;;  %v3708_v21 = vld [vmem:[#allocation4 + $0x320] sm:$0xf] }
 0x156   :  { %v1120_v32 = vadd.f32 %v1119_v19, %v1102_v29  ;;  %v1070_v33 = vpop.f32.mrf.mxu0  ;;  %v1088_v34 = vpop.f32.mrf.mxu1  ;;  %2177 = vmatpush.bf16.msra.mxu2 %v3665_v4  ;;  %v3773_v19 = vor.u32 %v4192_v17, %v3772_v16  ;;  %v4095_v29 = vld [vmem:[#allocation4 + $0xac] sm:$0xf]  ;;  %v4180_v4 = vld [vmem:[#allocation4 + $0x34c] sm:$0xf0] }
 0x157   :  { %v3401_v35 = vor.u32 %v4095_v29, %v3398_v30  ;;  %v3725_v9 = vor.u32 %v4180_v4, %v3724_v3  ;;  %v3709_v29 = vor.u32 %v4176_v22, %v3708_v21  ;;  %v3582_v30 = vld [vmem:[#allocation4 + $0x230] sm:$0xf0]  ;;  %v4135_v3 = vld [vmem:[#allocation4 + $0x1ec] sm:$0xf] }
 0x158   :  { %v1275_v47 = vmax.f32 %v1120_v32, 0.0  ;;  %v4506_v32 = vperm.slane %v4484_v27, 2  ;;  %2124 = vmatpush.bf16.msrb.mxu3 %v3773_v19 }
 0x159   :  { %2219 = vmatpush.bf16.msrb.mxu0 %v3317_v48  ;;  %v3382_v48 = vld [vmem:[#allocation4 + $0x98] sm:$0xf0] }
 0x15a   :  { %v4499_v37 = vpack.c.bf16 %v1275_v47, %v1271_v59  ;;  %2178 = vmatpush.bf16.msra.mxu2 %v3649_v25  ;;  %v3633_v59 = vor.u32 %v4154_v39, %v3630_v41  ;;  %v3509_v47 = vor.u32 %v4125_v46, %v3508_v45 }
 0x15b   :  { %v1104_v50 = vpop.f32.mrf.mxu2  ;;  %v1122_v51 = vpop.f32.mrf.mxu3 }
 0x15c   :  { %2094 = vmatmul.bf16.vlgmr.msrb.gmra.mxu1 %v4499_v37  ;;  %2148 = vmatmul.bf16.vlgmr.msra.gmra.mxu0 %v4487_v63  ;;  %v1105_v60 = vadd.f32 %v1104_v50, %v1087_v54  ;;  %v3385_v50 = vor.u32 %v4091_v23, %v3382_v48  ;;  %v3741_v54 = vor.u32 %v4184_v53, %v3740_v42  ;;  %v4138_v23 = vld [vmem:[#allocation4 + $0x204] sm:$0xf]  ;;  %v4109_v53 = vld [vmem:[#allocation4 + $0x114] sm:$0xf0] }
 0x15d   :  { %2230 = vmatpush.bf16.msrb.mxu1 %v3557_v58  ;;  %2284 = vmatpush.bf16.msra.mxu0 %v3433_v44  ;;  %v3493_v58 = vor.u32 %v4121_v57, %v3492_v56  ;;  %v4087_v44 = vld [vmem:[#allocation4 + $0x6c] sm:$0xf] }
 0x15e   :  { %v1135_v61 = vpop.f32.mrf.mxu0  ;;  %v4503_v62 = vpop.f32.mrf.mxu1  ;;  %v1123_v10 = vadd.f32 %v1122_v51, %v1105_v60  ;;  %2125 = vmatpush.bf16.msrb.mxu3 %v3757_v40  ;;  %2179 = vmatpush.bf16.msra.mxu2 %v3633_v59  ;;  %v3366_v60 = vld [vmem:[#allocation4 + $0x78] sm:$0xf0]  ;;  %v3692_v59 = vld [vmem:[#allocation4 + $0x300] sm:$0xf] }
 0x15f   :  { %v1136_v38 = vadd.f32 %v1135_v61, %v4506_v32  ;;  %v3369_v28 = vor.u32 %v4087_v44, %v3366_v60  ;;  %v4198_v44 = vld [vmem:[#allocation4 + $0x3e4] sm:$0xf]  ;;  %v3806_v60 = vld [vmem:[#allocation4 + $0x3f0] sm:$0xf0] }
 0x160   :  { %v1279_v31 = vmax.f32 %v1123_v10, 0.0  ;;  %v3598_v10 = vld [vmem:[#allocation4 + $0x250] sm:$0xf0] }
 0x161   :  { %2231 = vmatpush.bf16.msrb.mxu1 %v3541_v11  ;;  %2285 = vmatpush.bf16.msra.mxu0 %v3417_v14  ;;  %v1154_v61 = vadd.f32 %v4503_v62, %v1136_v38  ;;  %v3476_v11 = vld [vmem:[#allocation4 + $0x148] sm:$0xf]  ;;  %v3601_v12 = vor.u32 %v4146_v7, %v3598_v10  ;;  %v3350_v62 = vld [vmem:[#allocation4 + $0x58] sm:$0xf0] }
 0x162   :  { %v4508_v49 = vpack.c.bf16 %v1279_v31, %v1279_v31  ;;  %2126 = vmatpush.bf16.msrb.mxu3 %v3741_v54  ;;  %2180 = vmatpush.bf16.msra.mxu2 %v3617_v43  ;;  %v3460_v31 = vld [vmem:[#allocation4 + $0x128] sm:$0xf] }
 0x163   :  { %v1106_v13 = vpop.f32.mrf.mxu2  ;;  %v1124_v15 = vpop.f32.mrf.mxu3 }
 0x164   :  { %v4117_v13 = vld [vmem:[#allocation4 + $0x154] sm:$0xf0]  ;;  %v4083_v15 = vld [vmem:[#allocation4 + $0x4c] sm:$0xf] }
 0x165   :  { %2232 = vmatpush.bf16.msrb.mxu1 %v3525_v26  ;;  %2286 = vmatpush.bf16.msra.mxu0 %v3401_v35  ;;  %v3477_v16 = vor.u32 %v4117_v13, %v3476_v11  ;;  %v3353_v17 = vor.u32 %v4083_v15, %v3350_v62  ;;  %v3585_v35 = vor.u32 %v4142_v24, %v3582_v30  ;;  %v4194_v11 = vld [vmem:[#allocation4 + $0x3c4] sm:$0xf]  ;;  %v3668_v13 = vld [vmem:[#allocation4 + $0x2c8] sm:$0xf]  ;;  %v4165_v62 = vld [vmem:[#allocation4 + $0x2d4] sm:$0xf0] }
 0x166   :  { %v1137_v33 = vpop.f32.mrf.mxu0  ;;  %v1155_v34 = vpop.f32.mrf.mxu1  ;;  %2127 = vmatpush.bf16.msrb.mxu3 %v3725_v9  ;;  %2181 = vmatpush.bf16.msra.mxu2 %v3601_v12  ;;  %v3790_v12 = vld [vmem:[#allocation4 + $0x3d0] sm:$0xf0] }
 0x167   :  { %v1138_v0 = vadd.f32 %v1137_v33, %v4506_v32  ;;  %v4113_v33 = vld [vmem:[#allocation4 + $0x134] sm:$0xf0]  ;;  %v3793_v15 = vor.u32 %v4194_v11, %v3790_v12  ;;  %v4174_v11 = vld [vmem:[#allocation4 + $0x324] sm:$0xf]  ;;  %v3710_v12 = vld [vmem:[#allocation4 + $0x330] sm:$0xf0] }
 0x168   :  { %v3461_v36 = vor.u32 %v4113_v33, %v3460_v31  ;;  %v4161_v31 = vld [vmem:[#allocation4 + $0x2b4] sm:$0xf0]  ;;  %v4127_v33 = vld [vmem:[#allocation4 + $0x1ac] sm:$0xf] }
 0x169   :  { %2233 = vmatpush.bf16.msrb.mxu1 %v3509_v47  ;;  %2287 = vmatpush.bf16.msra.mxu0 %v3385_v50  ;;  %v1156_v14 = vadd.f32 %v1155_v34, %v1138_v0  ;;  %v4079_v34 = vld [vmem:[#allocation4 + $0x2c] sm:$0xf]  ;;  %v4172_v47 = vld [vmem:[#allocation4 + $0x30c] sm:$0xf0] }
 0x16a   :  { %2128 = vmatpush.bf16.msrb.mxu3 %v3709_v29  ;;  %v3337_v46 = vor.u32 %v4079_v34, %v3334_v20  ;;  %2182 = vmatpush.bf16.msra.mxu2 %v3585_v35  ;;  %v3693_v50 = vor.u32 %v4172_v47, %v3692_v59  ;;  %v3652_v29 = vld [vmem:[#allocation4 + $0x2a8] sm:$0xf]  ;;  %v3526_v35 = vld [vmem:[#allocation4 + $0x1b8] sm:$0xf0]  ;;  %v4186_v20 = vld [vmem:[#allocation4 + $0x384] sm:$0xf] }
 0x16b   :  { %v1171_v51 = vpop.f32.mrf.mxu2  ;;  %v1189_v5 = vpop.f32.mrf.mxu3  ;;  %v3529_v34 = vor.u32 %v4127_v33, %v3526_v35  ;;  %v4123_v59 = vld [vmem:[#allocation4 + $0x18c] sm:$0xf]  ;;  %v3510_v47 = vld [vmem:[#allocation4 + $0x198] sm:$0xf0] }
 0x16c   :  { %2099 = vmatmul.bf16.gmra.mxu1 %v4508_v49  ;;  %2153 = vmatmul.bf16.gmra.mxu0 %v4493_v52  ;;  %v1172_v8 = vadd.f32 %v1171_v51, %v1154_v61  ;;  %v3566_v51 = vld [vmem:[#allocation4 + $0x210] sm:$0xf0]  ;;  %v3684_v61 = vld [vmem:[#allocation4 + $0x2e8] sm:$0xf] }
 0x16d   :  { %2234 = vmatpush.bf16.msrb.mxu1 %v3493_v58  ;;  %2288 = vmatpush.bf16.msra.mxu0 %v3369_v28  ;;  %v3569_v42 = vor.u32 %v4138_v23, %v3566_v51  ;;  %v4169_v28 = vld [vmem:[#allocation4 + $0x2f4] sm:$0xf0] }
 0x16e   :  { %v1140_v1 = vpop.f32.mrf.mxu0  ;;  %v1158_v2 = vpop.f32.mrf.mxu1  ;;  %v1190_v25 = vadd.f32 %v1189_v5, %v1172_v8  ;;  %v3444_v5 = vld [vmem:[#allocation4 + $0x108] sm:$0xf]  ;;  %2129 = vmatpush.bf16.msrb.mxu3 %v3693_v50  ;;  %v3685_v4 = vor.u32 %v4169_v28, %v3684_v61 }
 0x16f   :  { %v1141_v39 = vadd.f32 %v1140_v1, %v4506_v32  ;;  %v3318_v32 = vld [vmem:[#allocation4 + $0x18] sm:$0xf0]  ;;  %v3445_v56 = vor.u32 %v4109_v53, %v3444_v5  ;;  %2183 = vmatpush.bf16.msra.mxu2 %v3569_v42  ;;  %v3809_v1 = vor.u32 %v4198_v44, %v3806_v60  ;;  %v4182_v42 = vld [vmem:[#allocation4 + $0x364] sm:$0xf]  ;;  %v3742_v53 = vld [vmem:[#allocation4 + $0x370] sm:$0xf0] }
 0x170   :  { %v1272_v48 = vmax.f32 %v1190_v25, 0.0  ;;  %v3321_v57 = vor.u32 %v4075_v6, %v3318_v32  ;;  %v4190_v25 = vld [vmem:[#allocation4 + $0x3a4] sm:$0xf]  ;;  %v3620_v6 = vld [vmem:[#allocation4 + $0x268] sm:$0xf]  ;;  %v3745_v32 = vor.u32 %v4182_v42, %v3742_v53 }
 0x171   :  { %2235 = vmatpush.bf16.msrb.mxu1 %v3477_v16  ;;  %2289 = vmatpush.bf16.msra.mxu0 %v3353_v17  ;;  %v1159_v54 = vadd.f32 %v1158_v2, %v1141_v39  ;;  %v3558_v2 = vld [vmem:[#allocation4 + $0x1f8] sm:$0xf0]  ;;  %v3669_v16 = vor.u32 %v4165_v62, %v3668_v13  ;;  %v3758_v39 = vld [vmem:[#allocation4 + $0x390] sm:$0xf0]  ;;  %v4178_v44 = vld [vmem:[#allocation4 + $0x344] sm:$0xf] }
 0x172   :  { %v3561_v7 = vor.u32 %v4135_v3, %v3558_v2  ;;  %2194 = vmatpush.bf16.msra.mxu3 %v3809_v1  ;;  %v3542_v17 = vld [vmem:[#allocation4 + $0x1d8] sm:$0xf0]  ;;  %v3726_v60 = vld [vmem:[#allocation4 + $0x350] sm:$0xf0]  ;;  %v3604_v61 = vld [vmem:[#allocation4 + $0x248] sm:$0xf] }
 0x173   :  { %v1173_v18 = vpop.f32.mrf.mxu2  ;;  %v1191_v19 = vpop.f32.mrf.mxu3  ;;  %v3729_v2 = vor.u32 %v4178_v44, %v3726_v60  ;;  %v4145_v62 = vld [vmem:[#allocation4 + $0x234] sm:$0xf0]  ;;  %v4167_v42 = vld [vmem:[#allocation4 + $0x2ec] sm:$0xf]  ;;  %v3670_v44 = vld [vmem:[#allocation4 + $0x2d8] sm:$0xf0] }
 0x174   :  { %v1174_v26 = vadd.f32 %v1173_v18, %v1156_v14  ;;  %v4131_v14 = vld [vmem:[#allocation4 + $0x1cc] sm:$0xf] }
 0x175   :  { %2236 = vmatpush.bf16.msrb.mxu1 %v3461_v36  ;;  %2290 = vmatpush.bf16.msra.mxu0 %v3337_v46  ;;  %v3545_v21 = vor.u32 %v4131_v14, %v3542_v17  ;;  %v3653_v36 = vor.u32 %v4161_v31, %v3652_v29  ;;  %v4157_v46 = vld [vmem:[#allocation4 + $0x294] sm:$0xf0]  ;;  %v4111_v17 = vld [vmem:[#allocation4 + $0x12c] sm:$0xf] }
 0x176   :  { %v1192_v40 = vadd.f32 %v1191_v19, %v1174_v26  ;;  %v1142_v41 = vpop.f32.mrf.mxu0  ;;  %v1160_v45 = vpop.f32.mrf.mxu1  ;;  %v4524_v19 = vperm.slane %v4484_v27, 3  ;;  %2195 = vmatpush.bf16.msra.mxu3 %v3793_v15  ;;  %v3774_v26 = vld [vmem:[#allocation4 + $0x3b0] sm:$0xf0]  ;;  %v3588_v15 = vld [vmem:[#allocation4 + $0x228] sm:$0xf] }
 0x177   :  { %v3777_v30 = vor.u32 %v4190_v25, %v3774_v26  ;;  %v3761_v45 = vor.u32 %v4186_v20, %v3758_v39  ;;  %v4170_v25 = vld [vmem:[#allocation4 + $0x304] sm:$0xf]  ;;  %v3694_v26 = vld [vmem:[#allocation4 + $0x310] sm:$0xf0]  ;;  %v3572_v20 = vld [vmem:[#allocation4 + $0x208] sm:$0xf] }
 0x178   :  { %v1276_v38 = vmax.f32 %v1192_v40, 0.0  ;;  %v3636_v40 = vld [vmem:[#allocation4 + $0x288] sm:$0xf]  ;;  %v4141_v39 = vld [vmem:[#allocation4 + $0x214] sm:$0xf0] }
 0x179   :  { %2237 = vmatpush.bf16.msrb.mxu1 %v3445_v56  ;;  %2291 = vmatpush.bf16.msra.mxu0 %v3321_v57  ;;  %v3637_v23 = vor.u32 %v4157_v46, %v3636_v40  ;;  %v4119_v56 = vld [vmem:[#allocation4 + $0x16c] sm:$0xf]  ;;  %v3494_v57 = vld [vmem:[#allocation4 + $0x178] sm:$0xf0]  ;;  %v3573_v46 = vor.u32 %v4141_v39, %v3572_v20 }
 0x17a   :  { %v4516_v55 = vpack.c.bf16 %v1276_v38, %v1272_v48  ;;  %2196 = vmatpush.bf16.msra.mxu3 %v3777_v30  ;;  %v3513_v48 = vor.u32 %v4123_v59, %v3510_v47  ;;  %v4107_v40 = vld [vmem:[#allocation4 + $0x10c] sm:$0xf]  ;;  %v3446_v59 = vld [vmem:[#allocation4 + $0x118] sm:$0xf0] }
 0x17b   :  { %v1176_v43 = vpop.f32.mrf.mxu2  ;;  %v1194_v58 = vpop.f32.mrf.mxu3  ;;  %v3590_v20 = vld [vmem:[#allocation4 + $0x238] sm:$0xf0] }
 0x17c   :  { %v1177_v0 = vadd.f32 %v1176_v43, %v1159_v54  ;;  %2112 = vmatmul.bf16.vlgmr.msrb.gmra.mxu2 %v4516_v55  ;;  %2166 = vmatmul.bf16.vlgmr.msra.gmra.mxu1 %v4499_v37  ;;  %v4153_v54 = vld [vmem:[#allocation4 + $0x274] sm:$0xf0] }
 0x17d   :  { %2220 = vmatmul.bf16.vlgmr.msrb.gmra.mxu0 %v4487_v63  ;;  %2248 = vmatpush.bf16.msrb.mxu2 %v3685_v4  ;;  %v3621_v43 = vor.u32 %v4153_v54, %v3620_v6  ;;  %v4149_v4 = vld [vmem:[#allocation4 + $0x254] sm:$0xf0]  ;;  %v3686_v6 = vld [vmem:[#allocation4 + $0x2f8] sm:$0xf0]  ;;  %v3796_v54 = vld [vmem:[#allocation4 + $0x3c8] sm:$0xf] }
 0x17e   :  { %v1195_v8 = vadd.f32 %v1194_v58, %v1177_v0  ;;  %v1207_v9 = vpop.f32.mrf.mxu0  ;;  %v4521_v10 = vpop.f32.mrf.mxu1  ;;  %2302 = vmatpush.bf16.msra.mxu1 %v3561_v7  ;;  %2197 = vmatpush.bf16.msra.mxu3 %v3761_v45  ;;  %v3497_v58 = vor.u32 %v4119_v56, %v3494_v57  ;;  %v4115_v7 = vld [vmem:[#allocation4 + $0x14c] sm:$0xf]  ;;  %v4197_v56 = vld [vmem:[#allocation4 + $0x3d4] sm:$0xf0] }
 0x17f   :  { %v1208_v50 = vadd.f32 %v1207_v9, %v4524_v19  ;;  %v3605_v9 = vor.u32 %v4149_v4, %v3604_v61  ;;  %v3654_v4 = vld [vmem:[#allocation4 + $0x2b8] sm:$0xf0] }
 0x180   :  { %v1280_v18 = vmax.f32 %v1195_v8, 0.0  ;;  %v3478_v8 = vld [vmem:[#allocation4 + $0x158] sm:$0xf0] }
 0x181   :  { %2249 = vmatpush.bf16.msrb.mxu2 %v3669_v16  ;;  %v1226_v0 = vadd.f32 %v4521_v10, %v1208_v50  ;;  %v3481_v14 = vor.u32 %v4115_v7, %v3478_v8  ;;  %v3713_v10 = vor.u32 %v4174_v11, %v3710_v12  ;;  %v3764_v7 = vld [vmem:[#allocation4 + $0x388] sm:$0xf]  ;;  %v4189_v8 = vld [vmem:[#allocation4 + $0x394] sm:$0xf0] }
 0x182   :  { %2303 = vmatpush.bf16.msra.mxu1 %v3545_v21  ;;  %v4526_v38 = vpack.c.bf16 %v1280_v18, %v1280_v18  ;;  %2198 = vmatpush.bf16.msra.mxu3 %v3745_v32  ;;  %v3462_v18 = vld [vmem:[#allocation4 + $0x138] sm:$0xf0]  ;;  %v3689_v32 = vor.u32 %v4167_v42, %v3686_v6  ;;  %v3765_v12 = vor.u32 %v4189_v8, %v3764_v7 }
 0x183   :  { %v1178_v22 = vpop.f32.mrf.mxu2  ;;  %v1196_v24 = vpop.f32.mrf.mxu3  ;;  %v3465_v31 = vor.u32 %v4111_v17, %v3462_v18  ;;  %v4151_v17 = vld [vmem:[#allocation4 + $0x26c] sm:$0xf]  ;;  %v3782_v6 = vld [vmem:[#allocation4 + $0x3b8] sm:$0xf0] }
 0x184   :  { %v3589_v24 = vor.u32 %v4145_v62, %v3588_v15  ;;  %v3638_v15 = vld [vmem:[#allocation4 + $0x298] sm:$0xf0] }
 0x185   :  { %2250 = vmatpush.bf16.msrb.mxu2 %v3653_v36  ;;  %v3702_v7 = vld [vmem:[#allocation4 + $0x318] sm:$0xf0] }
 0x186   :  { %v1209_v27 = vpop.f32.mrf.mxu0  ;;  %v1227_v41 = vpop.f32.mrf.mxu1  ;;  %2304 = vmatpush.bf16.msra.mxu1 %v3529_v34  ;;  %2199 = vmatpush.bf16.msra.mxu3 %v3729_v2  ;;  %v3697_v34 = vor.u32 %v4170_v25, %v3694_v26  ;;  %v4181_v25 = vld [vmem:[#allocation4 + $0x354] sm:$0xf0] }
 0x187   :  { %v1210_v1 = vadd.f32 %v1209_v27, %v4524_v19 }
 0x189   :  { %2251 = vmatpush.bf16.msrb.mxu2 %v3637_v23  ;;  %v1228_v16 = vadd.f32 %v1227_v41, %v1210_v1  ;;  %v3449_v23 = vor.u32 %v4107_v40, %v3446_v59  ;;  %v4193_v1 = vld [vmem:[#allocation4 + $0x3b4] sm:$0xf0]  ;;  %v3700_v40 = vld [vmem:[#allocation4 + $0x308] sm:$0xf] }
 0x18a   :  { %2305 = vmatpush.bf16.msra.mxu1 %v3513_v48  ;;  %2200 = vmatpush.bf16.msra.mxu3 %v3713_v10  ;;  %v4185_v10 = vld [vmem:[#allocation4 + $0x374] sm:$0xf0] }
 0x18b   :  { %v1243_v51 = vpop.f32.mrf.mxu2  ;;  %v1261_v5 = vpop.f32.mrf.mxu3 }
 0x18c   :  { %2117 = vmatmul.bf16.gmra.mxu2 %v4526_v38  ;;  %2171 = vmatmul.bf16.gmra.mxu1 %v4508_v49  ;;  %v1244_v13 = vadd.f32 %v1243_v51, %v1226_v0  ;;  %v3812_v51 = vld [vmem:[#allocation4 + $0x3e8] sm:$0xf] }
 0x18d   :  { %2225 = vmatmul.bf16.gmra.mxu0 %v4493_v52  ;;  %2252 = vmatpush.bf16.msrb.mxu2 %v3621_v43  ;;  %v3797_v43 = vor.u32 %v4197_v56, %v3796_v54  ;;  %v3780_v0 = vld [vmem:[#allocation4 + $0x3a8] sm:$0xf]  ;;  %v4187_v54 = vld [vmem:[#allocation4 + $0x38c] sm:$0xf]  ;;  %v3766_v56 = vld [vmem:[#allocation4 + $0x398] sm:$0xf0] }
 0x18e   :  { %v1212_v28 = vpop.f32.mrf.mxu0  ;;  %v1230_v3 = vpop.f32.mrf.mxu1  ;;  %2306 = vmatpush.bf16.msra.mxu1 %v3497_v58  ;;  %v1262_v29 = vadd.f32 %v1261_v5, %v1244_v13  ;;  %2201 = vmatpush.bf16.msra.mxu3 %v3697_v34  ;;  %v4201_v5 = vld [vmem:[#allocation4 + $0x3f4] sm:$0xf0]  ;;  %v4163_v58 = vld [vmem:[#allocation4 + $0x2cc] sm:$0xf] }
 0x18f   :  { %v1213_v41 = vadd.f32 %v1212_v28, %v4524_v19  ;;  %v3813_v19 = vor.u32 %v4201_v5, %v3812_v51  ;;  %v3673_v60 = vor.u32 %v4163_v58, %v3670_v44  ;;  %v4159_v28 = vld [vmem:[#allocation4 + $0x2ac] sm:$0xf]  ;;  %v3798_v5 = vld [vmem:[#allocation4 + $0x3d8] sm:$0xf0] }
 0x190   :  { %v1273_v27 = vmax.f32 %v1262_v29, 0.0  ;;  %v4155_v13 = vld [vmem:[#allocation4 + $0x28c] sm:$0xf]  ;;  %v3750_v44 = vld [vmem:[#allocation4 + $0x378] sm:$0xf0] }
 0x191   :  { %2253 = vmatpush.bf16.msrb.mxu2 %v3605_v9  ;;  %v1231_v53 = vadd.f32 %v1230_v3, %v1213_v41  ;;  %v3657_v9 = vor.u32 %v4159_v28, %v3654_v4  ;;  %v3641_v62 = vor.u32 %v4155_v13, %v3638_v15  ;;  %v4147_v29 = vld [vmem:[#allocation4 + $0x24c] sm:$0xf] }
 0x192   :  { %2307 = vmatpush.bf16.msra.mxu1 %v3481_v14  ;;  %v4139_v41 = vld [vmem:[#allocation4 + $0x20c] sm:$0xf] }
 0x193   :  { %v1245_v21 = vpop.f32.mrf.mxu2  ;;  %v1263_v22 = vpop.f32.mrf.mxu3  ;;  %v4195_v51 = vld [vmem:[#allocation4 + $0x3cc] sm:$0xf] }
 0x194   :  { %v1246_v30 = vadd.f32 %v1245_v21, %v1228_v16  ;;  %v3748_v16 = vld [vmem:[#allocation4 + $0x368] sm:$0xf]  ;;  %v3622_v21 = vld [vmem:[#allocation4 + $0x278] sm:$0xf0]  ;;  %v3801_v42 = vor.u32 %v4195_v51, %v3798_v5  ;;  %v4183_v58 = vld [vmem:[#allocation4 + $0x36c] sm:$0xf] }
 0x195   :  { %2254 = vmatpush.bf16.msrb.mxu2 %v3589_v24  ;;  %v3749_v18 = vor.u32 %v4185_v10, %v3748_v16  ;;  %v3732_v24 = vld [vmem:[#allocation4 + $0x348] sm:$0xf]  ;;  %v4171_v4 = vld [vmem:[#allocation4 + $0x30c] sm:$0xf]  ;;  %v4217_v51 = vld [vmem:[%s4713_s7 + $0x78] sm:$0xff] }
 0x196   :  { %v1264_v33 = vadd.f32 %v1263_v22, %v1246_v30  ;;  %v1214_v35 = vpop.f32.mrf.mxu0  ;;  %v1232_v36 = vpop.f32.mrf.mxu1  ;;  %2308 = vmatpush.bf16.msra.mxu1 %v3465_v31  ;;  %v3625_v22 = vor.u32 %v4151_v17, %v3622_v21  ;;  %v3733_v26 = vor.u32 %v4181_v25, %v3732_v24  ;;  %v3606_v30 = vld [vmem:[#allocation4 + $0x258] sm:$0xf0] }
 0x197   :  { %v3609_v31 = vor.u32 %v4147_v29, %v3606_v30  ;;  %v4177_v35 = vld [vmem:[#allocation4 + $0x334] sm:$0xf0]  ;;  %v4143_v36 = vld [vmem:[#allocation4 + $0x22c] sm:$0xf] }
 0x198   :  { %v1277_v45 = vmax.f32 %v1264_v33, 0.0  ;;  %v3716_v33 = vld [vmem:[#allocation4 + $0x328] sm:$0xf]  ;;  %v3593_v39 = vor.u32 %v4143_v36, %v3590_v20  ;;  %v4209_v24 = vld [vmem:[%s4713_s7 + $0x38] sm:$0xff]  ;;  %v4206_v36 = vld [vmem:[%s4713_s7 + $0x20] sm:$0xff] }
 0x199   :  { %2255 = vmatpush.bf16.msrb.mxu2 %v3573_v46  ;;  %v3717_v34 = vor.u32 %v4177_v35, %v3716_v33  ;;  %2636 = vmatpush.bf16.msrb.mxu0 %v4209_v24  ;;  %v4207_v30 = vld [vmem:[%s4713_s7 + $0x28] sm:$0xff] }
 0x19a   :  { %v4535_v47 = vpack.c.bf16 %v1277_v45, %v1273_v27  ;;  %2309 = vmatpush.bf16.msra.mxu1 %v3449_v23  ;;  %v4173_v27 = vld [vmem:[#allocation4 + $0x314] sm:$0xf0]  ;;  %v3574_v45 = vld [vmem:[#allocation4 + $0x218] sm:$0xf0]  ;;  %v4199_v23 = vld [vmem:[#allocation4 + $0x3ec] sm:$0xf] }
 0x19b   :  { %v1248_v48 = vpop.f32.mrf.mxu2  ;;  %v1266_v50 = vpop.f32.mrf.mxu3  ;;  %v3577_v46 = vor.u32 %v4139_v41, %v3574_v45  ;;  %v4204_v41 = vld [vmem:[%s4713_s7 + $0x10] sm:$0xff] }
 0x19c   :  { %2130 = vmatmul.bf16.vlgmr.msrb.gmra.mxu3 %v4535_v47  ;;  %2184 = vmatmul.bf16.vlgmr.msra.gmra.mxu2 %v4516_v55  ;;  %v1249_v57 = vadd.f32 %v1248_v48, %v1231_v53  ;;  %v3814_v48 = vld [vmem:[#allocation4 + $0x3f8] sm:$0xf0] }
 0x19d   :  { %2238 = vmatmul.bf16.vlgmr.msrb.gmra.mxu1 %v4499_v37  ;;  %2292 = vmatmul.bf16.vlgmr.msra.gmra.mxu0 %v4487_v63  ;;  %v3781_v63 = vor.u32 %v4193_v1, %v3780_v0  ;;  %v4556_v1 = vld [vmem:[%s4712_s6] sm:$0xf] }
 0x19e   :  { %2266 = vmatpush.bf16.msrb.mxu3 %v3813_v19  ;;  %2320 = vmatpush.bf16.msra.mxu2 %v3689_v32  ;;  %v1267_v61 = vadd.f32 %v1266_v50, %v1249_v57  ;;  %v3817_v50 = vor.u32 %v4199_v23, %v3814_v48  ;;  %v4191_v19 = vld [vmem:[#allocation4 + $0x3ac] sm:$0xf]  ;;  %v3769_v57 = vor.u32 %v4187_v54, %v3766_v56  ;;  %v1420_v8 = vperm.slane %v4556_v1, 0 }
 0x19f   :  { %v3785_v32 = vor.u32 %v4191_v19, %v3782_v6  ;;  %v1421_v29 = vperm.slane %v4556_v1, 1  ;;  %2654 = vmatpush.bf16.msrb.mxu1 %v4217_v51  ;;  %v4216_v19 = vld [vmem:[%s4713_s7 + $0x70] sm:$0xff]  ;;  %v1422_v6 = vperm.slane %v4556_v1, 2 }
 0x1a0   :  { %v1281_v11 = vmax.f32 %v1267_v61, 0.0  ;;  %v3734_v61 = vld [vmem:[#allocation4 + $0x358] sm:$0xf0] }
 0x1a2   :  { %2267 = vmatpush.bf16.msrb.mxu3 %v3797_v43  ;;  %2321 = vmatpush.bf16.msra.mxu2 %v3673_v60  ;;  %v4541_v14 = vpack.c.bf16 %v1281_v11, %v1281_v11  ;;  %v4179_v60 = vld [vmem:[#allocation4 + $0x34c] sm:$0xf] }
 0x1a3   :  { %v1250_v3 = vpop.f32.mrf.mxu2  ;;  %v1268_v2 = vpop.f32.mrf.mxu3  ;;  %v3737_v0 = vor.u32 %v4179_v60, %v3734_v61  ;;  %2655 = vmatpush.bf16.msrb.mxu1 %v4216_v19 }
 0x1a4   :  { %v4175_v3 = vld [vmem:[#allocation4 + $0x32c] sm:$0xf]  ;;  %v3718_v2 = vld [vmem:[#allocation4 + $0x338] sm:$0xf0] }
 0x1a6   :  { %2268 = vmatpush.bf16.msrb.mxu3 %v3781_v63  ;;  %2322 = vmatpush.bf16.msra.mxu2 %v3657_v9  ;;  %v3721_v63 = vor.u32 %v4175_v3, %v3718_v2  ;;  %v3705_v9 = vor.u32 %v4171_v4, %v3702_v7  ;;  %v4212_v3 = vld [vmem:[%s4713_s7 + $0x50] sm:$0xff] }
 0x1aa   :  { %2269 = vmatpush.bf16.msrb.mxu3 %v3765_v12  ;;  %2323 = vmatpush.bf16.msra.mxu2 %v3641_v62 }
 0x1ac   :  { %2135 = vmatmul.bf16.gmra.mxu3 %v4541_v14  ;;  %2189 = vmatmul.bf16.gmra.mxu2 %v4526_v38 }
 0x1ad   :  { %2243 = vmatmul.bf16.gmra.mxu1 %v4508_v49  ;;  %2297 = vmatmul.bf16.gmra.mxu0 %v4493_v52  ;;  %v3701_v52 = vor.u32 %v4173_v27, %v3700_v40 }
 0x1ae   :  { %2270 = vmatpush.bf16.msrb.mxu3 %v3749_v18  ;;  %2324 = vmatpush.bf16.msra.mxu2 %v3625_v22 }
 0x1b2   :  { %2271 = vmatpush.bf16.msrb.mxu3 %v3733_v26  ;;  %2325 = vmatpush.bf16.msra.mxu2 %v3609_v31  ;;  %v4208_v26 = vld [vmem:[%s4713_s7 + $0x30] sm:$0xff] }
 0x1b3   :  { %2637 = vmatpush.bf16.msrb.mxu0 %v4208_v26 }
 0x1b6   :  { %2272 = vmatpush.bf16.msrb.mxu3 %v3717_v34  ;;  %2326 = vmatpush.bf16.msra.mxu2 %v3593_v39  ;;  %v4205_v34 = vld [vmem:[%s4713_s7 + $0x18] sm:$0xff] }
 0x1b7   :  { %2638 = vmatpush.bf16.msrb.mxu0 %v4207_v30  ;;  %v4224_v30 = vld [vmem:[%s4713_s7 + $0xb0] sm:$0xff] }
 0x1b9   :  { %v2077_v59 = vpop.f32.mrf.mxu0 }
 0x1ba   :  { %2273 = vmatpush.bf16.msrb.mxu3 %v3701_v52  ;;  %2327 = vmatpush.bf16.msra.mxu2 %v3577_v46  ;;  %v2078_v11 = vadd.f32 %v2077_v59, %v1420_v8 }
 0x1bb   :  { %2639 = vmatpush.bf16.msrb.mxu0 %v4206_v36 }
 0x1bc   :  { %2202 = vmatmul.bf16.vlgmr.msra.gmra.mxu3 %v4535_v47  ;;  %2256 = vmatmul.bf16.vlgmr.msrb.gmra.mxu2 %v4516_v55 }
 0x1bd   :  { %2310 = vmatmul.bf16.vlgmr.msra.gmra.mxu1 %v4499_v37  ;;  %v3753_v37 = vor.u32 %v4183_v58, %v3750_v44  ;;  %v4213_v44 = vld [vmem:[%s4713_s7 + $0x58] sm:$0xff] }
 0x1be   :  { %2338 = vmatpush.bf16.msra.mxu3 %v3817_v50  ;;  %v4202_v50 = vld [vmem:[%s4713_s7] sm:$0xff] }
 0x1bf   :  { %2640 = vmatpush.bf16.msrb.mxu0 %v4205_v34 }
 0x1c1   :  { %v2079_v53 = vpop.f32.mrf.mxu0 }
 0x1c2   :  { %2339 = vmatpush.bf16.msra.mxu3 %v3801_v42  ;;  %v2080_v15 = vadd.f32 %v2079_v53, %v1420_v8 }
 0x1c3   :  { %2641 = vmatpush.bf16.msrb.mxu0 %v4204_v41 }
 0x1c6   :  { %2340 = vmatpush.bf16.msra.mxu3 %v3785_v32 }
 0x1c9   :  { %v2082_v43 = vpop.f32.mrf.mxu0 }
 0x1ca   :  { %2341 = vmatpush.bf16.msra.mxu3 %v3769_v57  ;;  %v2083_v17 = vadd.f32 %v2082_v43, %v1420_v8  ;;  %v4214_v43 = vld [vmem:[%s4713_s7 + $0x60] sm:$0xff]  ;;  %v4211_v8 = vld [vmem:[%s4713_s7 + $0x48] sm:$0xff] }
 0x1cc   :  { %2207 = vmatmul.bf16.gmra.mxu3 %v4541_v14  ;;  %2261 = vmatmul.bf16.gmra.mxu2 %v4526_v38 }
 0x1cd   :  { %2315 = vmatmul.bf16.gmra.mxu1 %v4508_v49 }
 0x1ce   :  { %2342 = vmatpush.bf16.msra.mxu3 %v3753_v37 }
 0x1d1   :  { %v2084_v28 = vpop.f32.mrf.mxu0 }
 0x1d2   :  { %2343 = vmatpush.bf16.msra.mxu3 %v3737_v0 }
 0x1d6   :  { %2344 = vmatpush.bf16.msra.mxu3 %v3721_v63 }
 0x1d9   :  { %v2095_v49 = vpop.f32.mrf.mxu1  ;;  %v2149_v12 = vpop.f32.mrf.mxu0 }
 0x1da   :  { %v4559_v13 = vadd.f32 %v2095_v49, %v2078_v11  ;;  %2345 = vmatpush.bf16.msra.mxu3 %v3705_v9  ;;  %v2150_v31 = vadd.f32 %v2149_v12, %v1421_v29 }
 0x1dc   :  { %2274 = vmatmul.bf16.vlgmr.msrb.gmra.mxu3 %v4535_v47  ;;  %2328 = vmatmul.bf16.vlgmr.msra.gmra.mxu2 %v4516_v55 }
 0x1e1   :  { %v2097_v62 = vpop.f32.mrf.mxu1  ;;  %v2151_v16 = vpop.f32.mrf.mxu0 }
 0x1e2   :  { %v4563_v10 = vadd.f32 %v2097_v62, %v2080_v15  ;;  %v2152_v39 = vadd.f32 %v2151_v16, %v1421_v29 }
 0x1e9   :  { %v2100_v18 = vpop.f32.mrf.mxu1  ;;  %v2154_v21 = vpop.f32.mrf.mxu0 }
 0x1ea   :  { %v4565_v22 = vadd.f32 %v2100_v18, %v2083_v17  ;;  %v2155_v46 = vadd.f32 %v2154_v21, %v1421_v29  ;;  %v4225_v21 = vld [vmem:[%s4713_s7 + $0xb8] sm:$0xff] }
 0x1eb   :  { %2672 = vmatpush.bf16.msrb.mxu2 %v4225_v21 }
 0x1ec   :  { %2279 = vmatmul.bf16.gmra.mxu3 %v4541_v14  ;;  %2333 = vmatmul.bf16.gmra.mxu2 %v4526_v38 }
 0x1ef   :  { %2673 = vmatpush.bf16.msrb.mxu2 %v4224_v30 }
 0x1f1   :  { %v2102_v55 = vpop.f32.mrf.mxu1  ;;  %v2156_v25 = vpop.f32.mrf.mxu0 }
 0x1f9   :  { %v2167_v38 = vpop.f32.mrf.mxu1 }
 0x1fa   :  { %v4579_v33 = vadd.f32 %v2167_v38, %v2150_v31  ;;  %v2221_v35 = vpop.f32.mrf.mxu0  ;;  %v1423_v38 = vperm.slane %v4556_v1, 3  ;;  %v4221_v1 = vld [vmem:[%s4713_s7 + $0x98] sm:$0xff] }
 0x1fb   :  { %v2222_v54 = vadd.f32 %v2221_v35, %v1422_v6  ;;  %v4223_v35 = vld [vmem:[%s4713_s7 + $0xa8] sm:$0xff] }
 0x1fc   :  { %2346 = vmatmul.bf16.vlgmr.msra.gmra.mxu3 %v4535_v47  ;;  %v4203_v47 = vld [vmem:[%s4713_s7 + $0x8] sm:$0xff]  ;;  %2674 = vmatpush.bf16.msrb.mxu2 %v4223_v35 }
 0x1fd   :  { %2642 = vmatpush.bf16.msrb.mxu0 %v4203_v47 }
 0x1ff   :  { %v2113_v20 = vpop.f32.mrf.mxu2 }
 0x200   :  { %v2114_v63 = vadd.f32 %v2113_v20, %v4559_v13  ;;  %v4210_v13 = vld [vmem:[%s4713_s7 + $0x40] sm:$0xff] }
 0x201   :  { %v2169_v40 = vpop.f32.mrf.mxu1  ;;  %2643 = vmatpush.bf16.msrb.mxu0 %v4202_v50 }
 0x202   :  { %v4588_v27 = vadd.f32 %v2169_v40, %v2152_v39  ;;  %v2223_v52 = vpop.f32.mrf.mxu0 }
 0x203   :  { %v2224_v61 = vadd.f32 %v2223_v52, %v1422_v6 }
 0x207   :  { %v2115_v45 = vpop.f32.mrf.mxu2 }
 0x208   :  { %v2116_v4 = vadd.f32 %v2115_v45, %v4563_v10 }
 0x209   :  { %v2172_v59 = vpop.f32.mrf.mxu1 }
 0x20a   :  { %v4596_v23 = vadd.f32 %v2172_v59, %v2155_v46  ;;  %v2226_v48 = vpop.f32.mrf.mxu0 }
 0x20b   :  { %v2227_v12 = vadd.f32 %v2226_v48, %v1422_v6  ;;  %v4220_v48 = vld [vmem:[%s4713_s7 + $0x90] sm:$0xff] }
 0x20c   :  { %2351 = vmatmul.bf16.gmra.mxu3 %v4541_v14  ;;  %v4215_v14 = vld [vmem:[%s4713_s7 + $0x68] sm:$0xff] }
 0x20d   :  { %2656 = vmatpush.bf16.msrb.mxu1 %v4215_v14 }
 0x20f   :  { %v2118_v5 = vpop.f32.mrf.mxu2 }
 0x210   :  { %v2119_v25 = vadd.f32 %v2118_v5, %v4565_v22  ;;  %v4222_v22 = vld [vmem:[%s4713_s7 + $0xa0] sm:$0xff] }
 0x211   :  { %v2174_v42 = vpop.f32.mrf.mxu1  ;;  %2657 = vmatpush.bf16.msrb.mxu1 %v4214_v43  ;;  %2675 = vmatpush.bf16.msrb.mxu2 %v4222_v22 }
 0x212   :  { %v2228_v53 = vpop.f32.mrf.mxu0 }
 0x213   :  { %v4219_v53 = vld [vmem:[%s4713_s7 + $0x88] sm:$0xff] }
 0x215   :  { %2658 = vmatpush.bf16.msrb.mxu1 %v4213_v44  ;;  %2676 = vmatpush.bf16.msrb.mxu2 %v4221_v1 }
 0x217   :  { %v2120_v32 = vpop.f32.mrf.mxu2 }
 0x219   :  { %2659 = vmatpush.bf16.msrb.mxu1 %v4212_v3  ;;  %2677 = vmatpush.bf16.msrb.mxu2 %v4220_v48 }
 0x21a   :  { %v2239_v56 = vpop.f32.mrf.mxu1  ;;  %v2293_v57 = vpop.f32.mrf.mxu0 }
 0x21b   :  { %v4615_v58 = vadd.f32 %v2239_v56, %v2222_v54  ;;  %v2294_v39 = vadd.f32 %v2293_v57, %v1423_v38 }
 0x21d   :  { %2660 = vmatpush.bf16.msrb.mxu1 %v4211_v8  ;;  %2678 = vmatpush.bf16.msrb.mxu2 %v4219_v53 }
 0x21f   :  { %v2131_v37 = vpop.f32.mrf.mxu3  ;;  %v2185_v60 = vpop.f32.mrf.mxu2 }
 0x220   :  { %v2132_v7 = vadd.f32 %v2131_v37, %v2114_v63  ;;  %v2186_v51 = vadd.f32 %v2185_v60, %v4579_v33  ;;  %v4218_v33 = vld [vmem:[%s4713_s7 + $0x80] sm:$0xff]  ;;  %v4231_v63 = vld [vmem:[%s4713_s7 + $0xe8] sm:$0xff] }
 0x221   :  { %2661 = vmatpush.bf16.msrb.mxu1 %v4210_v13  ;;  %2679 = vmatpush.bf16.msrb.mxu2 %v4218_v33 }
 0x222   :  { %v2241_v0 = vpop.f32.mrf.mxu1  ;;  %v2295_v28 = vpop.f32.mrf.mxu0  ;;  %v2356_v15 = vmax.f32 %v2132_v7, 0.0 }
 0x223   :  { %v4623_v2 = vadd.f32 %v2241_v0, %v2224_v61  ;;  %v2296_v46 = vadd.f32 %v2295_v28, %v1423_v38  ;;  %v4232_v28 = vld [vmem:[%s4713_s7 + $0xf0] sm:$0xff] }
 0x227   :  { %v2133_v9 = vpop.f32.mrf.mxu3  ;;  %v2187_v11 = vpop.f32.mrf.mxu2 }
 0x228   :  { %v2134_v49 = vadd.f32 %v2133_v9, %v2116_v4  ;;  %v2188_v5 = vadd.f32 %v2187_v11, %v4588_v27  ;;  %v4233_v27 = vld [vmem:[%s4713_s7 + $0xf8] sm:$0xff]  ;;  %v4230_v9 = vld [vmem:[%s4713_s7 + $0xe0] sm:$0xff] }
 0x229   :  { %2690 = vmatpush.bf16.msrb.mxu3 %v4233_v27  ;;  %v4229_v11 = vld [vmem:[%s4713_s7 + $0xd8] sm:$0xff] }
 0x22a   :  { %v2360_v62 = vmax.f32 %v2134_v49, 0.0  ;;  %v2244_v16 = vpop.f32.mrf.mxu1  ;;  %v2298_v17 = vpop.f32.mrf.mxu0 }
 0x22b   :  { %v4633_v18 = vadd.f32 %v2244_v16, %v2227_v12  ;;  %v2299_v32 = vadd.f32 %v2298_v17, %v1423_v38  ;;  %v4227_v16 = vld [vmem:[%s4713_s7 + $0xc8] sm:$0xff] }
 0x22c   :  { %v2368_v10 = vpack.c.bf16 %v2360_v62, %v2356_v15  ;;  %v4228_v15 = vld [vmem:[%s4713_s7 + $0xd0] sm:$0xff] }
 0x22d   :  { %2691 = vmatpush.bf16.msrb.mxu3 %v4232_v28 }
 0x22e   :  { %2644 = vmatmul.bf16.vlgmr.msrb.gmra.mxu0 %v2368_v10 }
 0x22f   :  { %v2136_v24 = vpop.f32.mrf.mxu3  ;;  %v2190_v55 = vpop.f32.mrf.mxu2 }
 0x230   :  { %v2137_v31 = vadd.f32 %v2136_v24, %v2119_v25  ;;  %v2191_v61 = vadd.f32 %v2190_v55, %v4596_v23 }
 0x231   :  { %2692 = vmatpush.bf16.msrb.mxu3 %v4231_v63 }
 0x232   :  { %v2246_v26 = vpop.f32.mrf.mxu1  ;;  %v2300_v29 = vpop.f32.mrf.mxu0  ;;  %v2364_v20 = vmax.f32 %v2137_v31, 0.0 }
 0x233   :  { %v4226_v26 = vld [vmem:[%s4713_s7 + $0xc0] sm:$0xff] }
 0x234   :  { %v2372_v41 = vpack.c.bf16 %v2364_v20, %v2364_v20 }
 0x235   :  { %2693 = vmatpush.bf16.msrb.mxu3 %v4230_v9 }
 0x237   :  { %v2138_v36 = vpop.f32.mrf.mxu3  ;;  %v2192_v34 = vpop.f32.mrf.mxu2 }
 0x239   :  { %2694 = vmatpush.bf16.msrb.mxu3 %v4229_v11 }
 0x23a   :  { %v2311_v40 = vpop.f32.mrf.mxu1 }
 0x23b   :  { %v4649_v52 = vadd.f32 %v2311_v40, %v2294_v39 }
 0x23d   :  { %2695 = vmatpush.bf16.msrb.mxu3 %v4228_v15 }
 0x23e   :  { %2649 = vmatmul.bf16.gmra.mxu0 %v2372_v41 }
 0x23f   :  { %v2203_v47 = vpop.f32.mrf.mxu3  ;;  %v2257_v45 = vpop.f32.mrf.mxu2 }
 0x240   :  { %v2204_v42 = vadd.f32 %v2203_v47, %v2186_v51  ;;  %v2258_v62 = vadd.f32 %v2257_v45, %v4615_v58 }
 0x241   :  { %2696 = vmatpush.bf16.msrb.mxu3 %v4227_v16 }
 0x242   :  { %v2313_v59 = vpop.f32.mrf.mxu1  ;;  %v2357_v54 = vmax.f32 %v2204_v42, 0.0 }
 0x243   :  { %v4657_v50 = vadd.f32 %v2313_v59, %v2296_v46 }
 0x245   :  { %2697 = vmatpush.bf16.msrb.mxu3 %v4226_v26 }
 0x247   :  { %v2205_v19 = vpop.f32.mrf.mxu3  ;;  %v2259_v6 = vpop.f32.mrf.mxu2 }
 0x248   :  { %v2206_v14 = vadd.f32 %v2205_v19, %v2188_v5  ;;  %v2260_v17 = vadd.f32 %v2259_v6, %v4623_v2 }
 0x24a   :  { %v2361_v56 = vmax.f32 %v2206_v14, 0.0  ;;  %v2316_v57 = vpop.f32.mrf.mxu1 }
 0x24b   :  { %v2317_v43 = vadd.f32 %v2316_v57, %v2299_v32 }
 0x24c   :  { %v2369_v44 = vpack.c.bf16 %v2361_v56, %v2357_v54 }
 0x24e   :  { %2662 = vmatmul.bf16.vlgmr.msrb.gmra.mxu1 %v2369_v44 }
 0x24f   :  { %v2208_v37 = vpop.f32.mrf.mxu3  ;;  %v2262_v60 = vpop.f32.mrf.mxu2 }
 0x250   :  { %v2209_v3 = vadd.f32 %v2208_v37, %v2191_v61  ;;  %v2263_v31 = vadd.f32 %v2262_v60, %v4633_v18 }
 0x252   :  { %v2318_v0 = vpop.f32.mrf.mxu1  ;;  %v2365_v8 = vmax.f32 %v2209_v3, 0.0 }
 0x254   :  { %v2373_v23 = vpack.c.bf16 %v2365_v8, %v2365_v8 }
 0x257   :  { %v2210_v4 = vpop.f32.mrf.mxu3  ;;  %v2264_v7 = vpop.f32.mrf.mxu2 }
 0x25e   :  { %2667 = vmatmul.bf16.gmra.mxu1 %v2373_v23 }
 0x25f   :  { %v2275_v49 = vpop.f32.mrf.mxu3  ;;  %v2329_v12 = vpop.f32.mrf.mxu2 }
 0x260   :  { %v2276_v13 = vadd.f32 %v2275_v49, %v2258_v62  ;;  %v2330_v22 = vadd.f32 %v2329_v12, %v4649_v52 }
 0x262   :  { %v2358_v55 = vmax.f32 %v2276_v13, 0.0 }
 0x267   :  { %v2277_v10 = vpop.f32.mrf.mxu3  ;;  %v2331_v21 = vpop.f32.mrf.mxu2 }
 0x268   :  { %v2278_v24 = vadd.f32 %v2277_v10, %v2260_v17  ;;  %v2332_v39 = vadd.f32 %v2331_v21, %v4657_v50  ;;  %v4243_v50 = vld [vmem:[%s4714_s8] ss:$0 sm:$0xff] }
 0x26a   :  { %v2362_v25 = vmax.f32 %v2278_v24, 0.0 }
 0x26c   :  { %v2370_v29 = vpack.c.bf16 %v2362_v25, %v2358_v55 }
 0x26e   :  { %2680 = vmatmul.bf16.vlgmr.msrb.gmra.mxu2 %v2370_v29 }
 0x26f   :  { %v2280_v58 = vpop.f32.mrf.mxu3  ;;  %v2334_v30 = vpop.f32.mrf.mxu2 }
 0x270   :  { %v2281_v38 = vadd.f32 %v2280_v58, %v2263_v31  ;;  %v2335_v18 = vadd.f32 %v2334_v30, %v2317_v43 }
 0x272   :  { %v2366_v36 = vmax.f32 %v2281_v38, 0.0 }
 0x274   :  { %v2374_v34 = vpack.c.bf16 %v2366_v36, %v2366_v36 }
 0x277   :  { %v2282_v2 = vpop.f32.mrf.mxu3  ;;  %v2336_v35 = vpop.f32.mrf.mxu2 }
 0x27e   :  { %2685 = vmatmul.bf16.gmra.mxu2 %v2374_v34 }
 0x27f   :  { %v2347_v20 = vpop.f32.mrf.mxu3 }
 0x280   :  { %v2348_v40 = vadd.f32 %v2347_v20, %v2330_v22 }
 0x282   :  { %v2359_v47 = vmax.f32 %v2348_v40, 0.0 }
 0x287   :  { %v2349_v41 = vpop.f32.mrf.mxu3 }
 0x288   :  { %v2350_v1 = vadd.f32 %v2349_v41, %v2332_v39 }
 0x28a   :  { %v2363_v45 = vmax.f32 %v2350_v1, 0.0 }
 0x28c   :  { %v2371_v46 = vpack.c.bf16 %v2363_v45, %v2359_v47 }
 0x28e   :  { %2698 = vmatmul.bf16.vlgmr.msrb.gmra.mxu3 %v2371_v46 }
 0x28f   :  { %v2352_v59 = vpop.f32.mrf.mxu3 }
 0x290   :  { %v2353_v48 = vadd.f32 %v2352_v59, %v2335_v18 }
 0x292   :  { %v2367_v5 = vmax.f32 %v2353_v48, 0.0 }
 0x294   :  { %v2375_v42 = vpack.c.bf16 %v2367_v5, %v2367_v5 }
 0x297   :  { %v2354_v51 = vpop.f32.mrf.mxu3 }
 0x29e   :  { %2703 = vmatmul.bf16.gmra.mxu3 %v2375_v42 }
 0x2ab   :  { %v2645_v53 = vpop.f32.mrf.mxu0 }
 0x2ac   :  { %v2646_v14 = vadd.f32 %v4243_v50, %v2645_v53 }
 0x2b3   :  { %v2647_v19 = vpop.f32.mrf.mxu0 }
 0x2b4   :  { %v2648_v56 = vadd.f32 %v4243_v50, %v2647_v19 }
 0x2bb   :  { %v2650_v6 = vpop.f32.mrf.mxu0 }
 0x2bc   :  { %v2651_v43 = vadd.f32 %v4243_v50, %v2650_v6 }
 0x2c3   :  { %v2652_v52 = vpop.f32.mrf.mxu0 }
 0x2cb   :  { %v2663_v32 = vpop.f32.mrf.mxu1 }
 0x2cc   :  { %v2664_v54 = vadd.f32 %v2663_v32, %v2646_v14 }
 0x2d3   :  { %v2665_v57 = vpop.f32.mrf.mxu1 }
 0x2d4   :  { %v2666_v33 = vadd.f32 %v2665_v57, %v2648_v56 }
 0x2db   :  { %v2668_v44 = vpop.f32.mrf.mxu1 }
 0x2dc   :  { %v2669_v27 = vadd.f32 %v2668_v44, %v2651_v43 }
 0x2e3   :  { %v2670_v37 = vpop.f32.mrf.mxu1 }
 0x2f1   :  { %v2681_v60 = vpop.f32.mrf.mxu2 }
 0x2f2   :  { %v2682_v3 = vadd.f32 %v2681_v60, %v2664_v54 }
 0x2f9   :  { %v2683_v61 = vpop.f32.mrf.mxu2 }
 0x2fa   :  { %v2684_v7 = vadd.f32 %v2683_v61, %v2666_v33 }
 0x301   :  { %v2686_v0 = vpop.f32.mrf.mxu2 }
 0x302   :  { %v2687_v23 = vadd.f32 %v2686_v0, %v2669_v27 }
 0x309   :  { %v2688_v28 = vpop.f32.mrf.mxu2 }
 0x311   :  { %v2699_v63 = vpop.f32.mrf.mxu3 }
 0x312   :  { %v2700_v4 = vadd.f32 %v2699_v63, %v2682_v3 }
 0x314   :  { %2708 = vmax.xlane.f32.xlu0 %v2700_v4 }
 0x319   :  { %v2701_v8 = vpop.f32.mrf.mxu3 }
 0x31a   :  { %v2702_v9 = vadd.f32 %v2701_v8, %v2684_v7 }
 0x31c   :  { %2710 = vmax.xlane.f32.xlu0 %v2702_v9 }
 0x321   :  { %v2704_v11 = vpop.f32.mrf.mxu3 }
 0x322   :  { %v2705_v49 = vadd.f32 %v2704_v11, %v2687_v23 }
 0x324   :  { %2712 = vmax.xlane.f32.xlu1 %v2705_v49 }
 0x329   :  { %v2706_v12 = vpop.f32.mrf.mxu3 }
 0x387   :  { %v2709_v15 = vpop.xlane.xlu0 %2708 }
 0x388   :  { %v2714_v62 = vsub.f32 %v2700_v4, %v2709_v15 }
 0x38a   :  { %v2717_v16 = vmul.f32 1.442695, %v2714_v62 }
 0x38c   :  { %4244 = vpow2.f32 %v2717_v16 }
 0x38f   :  { %v2711_v17 = vpop.xlane.xlu0 %2710 }
 0x390   :  { %v2715_v13 = vsub.f32 %v2702_v9, %v2711_v17 }
 0x392   :  { %v4245_v10 = vpop.eup %4244  ;;  %v2719_v21 = vmul.f32 1.442695, %v2715_v13 }
 0x393   :  { %2723 = vadd.xlane.f32.xlu1 %v4245_v10 }
 0x394   :  { %4246 = vpow2.f32 %v2719_v21 }
 0x397   :  { %v2713_v24 = vpop.xlane.xlu1 %2712 }
 0x398   :  { %v2716_v55 = vsub.f32 %v2705_v49, %v2713_v24 }
 0x39a   :  { %v4247_v25 = vpop.eup %4246  ;;  %v2721_v26 = vmul.f32 1.442695, %v2716_v55 }
 0x39b   :  { %2725 = vadd.xlane.f32.xlu2 %v4247_v25 }
 0x39c   :  { %4248 = vpow2.f32 %v2721_v26 }
 0x3a2   :  { %v4249_v29 = vpop.eup %4248 }
 0x3a3   :  { %2727 = vadd.xlane.f32.xlu2 %v4249_v29 }
 0x406   :  { %v2724_v58 = vpop.xlane.xlu1 %2723 }
 0x407   :  { %4250 = vrcp.f32 %v2724_v58  ;;  %v2740_v39 = vand.u32 2147483648, %v2724_v58  ;;  %vm2734_vm3 = vweird.f32 %v2724_v58  ;;  %v2738_v40 = vand.u32 2147483647, %v2724_v58 }
 0x409   :  { %v2741_v59 = vor.u32 1.1754944e-38, %v2740_v39  ;;  %vm2739_vm6 = vcmp.eq.f32.partialorder %v2738_v40, 8.507059e+37 }
 0x40d   :  { %v4251_v30 = vpop.eup %4250 }
 0x40e   :  { %v2730_v31 = vmul.f32 %v4251_v30, %v2724_v58  ;;  %v2726_v38 = vpop.xlane.xlu2 %2725  ;;  %vm2735_vm2 = vweird.f32 %v4251_v30 }
 0x40f   :  { %4252 = vrcp.f32 %v2726_v38  ;;  %vm2736_vm4 = vmor %vm2734_vm3, %vm2735_vm2  ;;  %v2755_v1 = vand.u32 2147483648, %v2726_v38  ;;  %v2753_v46 = vand.u32 2147483647, %v2726_v38  ;;  %vm2749_vm7 = vweird.f32 %v2726_v38 }
 0x410   :  { %v2731_v2 = vsub.f32 1.0, %v2730_v31 }
 0x411   :  { %v2756_v5 = vor.u32 1.1754944e-38, %v2755_v1  ;;  %vm2754_vm9 = vcmp.eq.f32.partialorder %v2753_v46, 8.507059e+37 }
 0x412   :  { %v2732_v35 = vmul.f32 %v4251_v30, %v2731_v2 }
 0x414   :  { %v2733_v34 = vadd.f32 %v4251_v30, %v2732_v35 }
 0x415   :  { %v4253_v36 = vpop.eup %4252 }
 0x416   :  { %v2745_v20 = vmul.f32 %v4253_v36, %v2726_v38  ;;  %v2728_v22 = vpop.xlane.xlu2 %2727  ;;  %v2737_v47 = vsel %vm2736_vm4, %v4251_v30, %v2733_v34  ;;  %vm2750_vm5 = vweird.f32 %v4253_v36 }
 0x417   :  { %4254 = vrcp.f32 %v2728_v22  ;;  %v2742_v51 = vsel %vm2739_vm6, %v2741_v59, %v2737_v47  ;;  %vm2751_vm8 = vmor %vm2749_vm7, %vm2750_vm5  ;;  %v2770_v14 = vand.u32 2147483648, %v2728_v22  ;;  %v2768_v56 = vand.u32 2147483647, %v2728_v22 }
 0x418   :  { %v2746_v41 = vsub.f32 1.0, %v2745_v20  ;;  %v2743_v6 = vmul.f32 %v4245_v10, %v2742_v51  ;;  %vm2764_vm11 = vweird.f32 %v2728_v22 }
 0x419   :  { %v2771_v33 = vor.u32 1.1754944e-38, %v2770_v14  ;;  %vm2769_vm13 = vcmp.eq.f32.partialorder %v2768_v56, 8.507059e+37 }
 0x41a   :  { %v2747_v45 = vmul.f32 %v4253_v36, %v2746_v41 }
 0x41c   :  { %v2748_v18 = vadd.f32 %v4253_v36, %v2747_v45 }
 0x41d   :  { %v4255_v48 = vpop.eup %4254 }
 0x41e   :  { %v2752_v42 = vsel %vm2751_vm8, %v4253_v36, %v2748_v18  ;;  %v2760_v53 = vmul.f32 %v4255_v48, %v2728_v22  ;;  %vm2765_vm10 = vweird.f32 %v4255_v48 }
 0x41f   :  { %v2757_v19 = vsel %vm2754_vm9, %v2756_v5, %v2752_v42  ;;  %vm2766_vm12 = vmor %vm2764_vm11, %vm2765_vm10 }
 0x420   :  { %v2758_v52 = vmul.f32 %v4247_v25, %v2757_v19  ;;  %v2761_v50 = vsub.f32 1.0, %v2760_v53 }
 0x422   :  { %v4237_v32 = vpack.c.bf16 %v2758_v52, %v2743_v6  ;;  %v2762_v54 = vmul.f32 %v4255_v48, %v2761_v50 }
 0x424   :  { %4238 = vst [vmem:[%s4715_s9] sm:$0xff] %v4237_v32   ;;  %v2763_v57 = vadd.f32 %v4255_v48, %v2762_v54 }
 0x426   :  { %v2767_v43 = vsel %vm2766_vm12, %v4255_v48, %v2763_v57 }
 0x427   :  { %v2772_v44 = vsel %vm2769_vm13, %v2771_v33, %v2767_v43 }
 0x428   :  { %v2773_v27 = vmul.f32 %v4249_v29, %v2772_v44 }
 0x42a   :  { %v2776_v37 = vpack.c.bf16 %v2773_v27, %v2773_v27 }
 0x42c   :  { %2779 = vst [vmem:[%s4715_s9 + $0x8] sm:$0xf] %v2776_v37 }
 0x42d   :  { %2784 = vsyncpa [#allocation3], 1 }
 0x42e   :  { %2785 = vsyncpa [#allocation5], 1 }

</bundles_post_ra>
